<compile_context>
chip_gen: v6e
topology: v6e:2x2x1
jax: 0.10.0
libtpu: 0.0.40
codegen_flags: <defaults>
</compile_context>

<pallas_src>
import functools

import numpy as np
import jax
import jax.numpy as jnp
from jax import lax
from jax.experimental import pallas as pl
from jax.experimental.pallas import tpu as pltpu

EPS = 1e-5
ENC_DIMS = [192, 175, 125, 100]
DEC_DIMS = [100, 125, 175, 192]
LAYER_DIMS = list(zip(ENC_DIMS[:-1], ENC_DIMS[1:])) + list(
    zip(DEC_DIMS[:-1], DEC_DIMS[1:]))
NUM_LAYERS = len(LAYER_DIMS)          # 3 encoder + 3 decoder


def _round_up(n, m):
    return ((n + m - 1) // m) * m


# Per-layer lane-dense padding (multiples of 128).
KIN_PAD = [_round_up(d, 128) for d, _ in LAYER_DIMS]
KOUT_PAD = [_round_up(d, 128) for _, d in LAYER_DIMS]
assert all(KOUT_PAD[i] == KIN_PAD[i + 1] for i in range(NUM_LAYERS - 1))


# ---------------------------------------------------------------------------
# Kernels
# ---------------------------------------------------------------------------
def _fcae_fused_kernel(x_ref, *refs, n_layers, final_tanh, inv_b, matmul_dtype,
                       mask_rows):
    """Whole-batch-resident fast path (grid-less).

    x_ref : (B_pad, KIN_PAD[0]) in matmul_dtype (layer-0 cast done in wrapper)
    refs  : (w_0..w_{L-1}, gb_0..gb_{L-1}, out_ref)
            w_i : (KIN_PAD[i], KOUT_PAD[i]) matmul_dtype, zero padded
            gb_i: (8, KOUT_PAD[i]) f32; row 0 = gamma, row 1 = beta (pad = 0)
    """
    out_ref = refs[2 * n_layers]
    x = x_ref[...]

    row_mask = None
    if mask_rows is not None:
        # Padded batch rows must be re-zeroed after every layer so they never
        # contribute to the NEXT layer's batch statistics.
        rows = lax.broadcasted_iota(jnp.int32, (x.shape[0], 1), 0)
        row_mask = (rows < mask_rows).astype(jnp.float32)

    act = None
    for i in range(n_layers):
        w = refs[i][...]
        gb = refs[n_layers + i]

        # Linear (bias folded away: training-mode BN subtracts the batch mean,
        # which cancels any per-column constant).  f32 accumulation on MXU.
        y = jnp.dot(x, w, preferred_element_type=jnp.float32)

        # Single-pass batch statistics (biased variance, PyTorch training BN),
        # always in f32.  TODO(synk): Welford / two-pass for huge batches.
        mean = jnp.sum(y, axis=0, keepdims=True) * inv_b
        var = jnp.maximum(
            jnp.sum(y * y, axis=0, keepdims=True) * inv_b - mean * mean, 0.0)

        scale = gb[0:1, :] * lax.rsqrt(var + EPS)      # rsqrt -> EUP slot
        shift = gb[1:2, :] - mean * scale
        z = y * scale + shift

        if final_tanh and i == n_layers - 1:
            act = jnp.tanh(z)
        else:
            act = jnp.maximum(z, 0.0)

        if i < n_layers - 1:
            nxt = act if row_mask is None else act * row_mask
            x = nxt.astype(matmul_dtype)               # cast fused into act

    out_ref[...] = act                                 # f32, lane-dense store


def _fc_bn_layer_kernel(x_ref, w_ref, gb_ref, out_ref, stats_ref, *,
                        inv_b, final_tanh, batch_tile, mask_rows):
    """One Linear+BN+activation layer, batch-tiled, two passes over the grid.

    grid = (2, n_batch_tiles).  Pass 0 accumulates per-column sum / sumsq into
    stats_ref; pass 1 recomputes y (cheaper than an HBM round-trip for y) and
    applies the folded BN scale/shift + activation.
    """
    p = pl.program_id(0)          # 0: stats pass, 1: apply pass
    b = pl.program_id(1)

    @pl.when(jnp.logical_and(p == 0, b == 0))
    def _():
        stats_ref[...] = jnp.zeros_like(stats_ref)

    y = jnp.dot(x_ref[...], w_ref[...], preferred_element_type=jnp.float32)

    @pl.when(p == 0)
    def _():
        stats_ref[0:1, :] += jnp.sum(y, axis=0, keepdims=True)
        stats_ref[1:2, :] += jnp.sum(y * y, axis=0, keepdims=True)

    @pl.when(p == 1)
    def _():
        mean = stats_ref[0:1, :] * inv_b
        var = jnp.maximum(stats_ref[1:2, :] * inv_b - mean * mean, 0.0)
        scale = gb_ref[0:1, :] * lax.rsqrt(var + EPS)
        shift = gb_ref[1:2, :] - mean * scale
        z = y * scale + shift
        act = jnp.tanh(z) if final_tanh else jnp.maximum(z, 0.0)
        if mask_rows is not None:
            rows = b * batch_tile + lax.broadcasted_iota(
                jnp.int32, (batch_tile, 1), 0)
            act = act * (rows < mask_rows).astype(jnp.float32)
        out_ref[...] = act.astype(out_ref.dtype)


# ---------------------------------------------------------------------------
# Parameters
# ---------------------------------------------------------------------------
def init_params(key):
    """Deterministic synthetic parameters matching the PyTorch module shapes.

    Weights stored as (in, out); bias / gamma / beta as (1, out)."""
    params = []
    for din, dout in LAYER_DIMS:
        key, kw, kb, kg, kbe = jax.random.split(key, 5)
        w = jax.random.normal(kw, (din, dout), jnp.float32) / jnp.sqrt(din)
        b = 0.05 * jax.random.normal(kb, (1, dout), jnp.float32)
        g = 1.0 + 0.1 * jax.random.normal(kg, (1, dout), jnp.float32)
        be = 0.05 * jax.random.normal(kbe, (1, dout), jnp.float32)
        params.append((w, b, g, be))
    return params


def pack_params(layer_params, use_bf16=False):
    """One-time packing (numpy, hoisted off the per-call path).

    Returns per-layer lane-padded arrays:
      w_list[i]  : (KIN_PAD[i], KOUT_PAD[i]) in f32 or bf16 (MXU operand dtype)
      gb_list[i] : (8, KOUT_PAD[i]) f32, gamma on row 0, beta on row 1.
    The Linear bias is deliberately dropped (cancelled by training-mode BN's
    batch-mean subtraction).  On v5e prefer use_bf16=True: the MXU is the
    binding unit there and bf16 operands run at full peak.
    """
    w_dtype = jnp.bfloat16 if use_bf16 else jnp.float32
    w_list, gb_list = [], []
    for i, (w, _b, g, be) in enumerate(layer_params):
        din, dout = LAYER_DIMS[i]
        wp = np.zeros((KIN_PAD[i], KOUT_PAD[i]), np.float32)
        wp[:din, :dout] = np.asarray(w, np.float32)
        gbp = np.zeros((8, KOUT_PAD[i]), np.float32)
        gbp[0, :dout] = np.asarray(g, np.float32)[0]
        gbp[1, :dout] = np.asarray(be, np.float32)[0]
        w_list.append(jnp.asarray(wp, dtype=w_dtype))
        gb_list.append(jnp.asarray(gbp, dtype=jnp.float32))
    return w_list, gb_list


def _vmem_capacity_bytes():
    try:
        cap = getattr(pltpu.get_tpu_info(), "vmem_capacity_bytes", None)
        if cap:
            return int(cap)
    except Exception:
        pass
    return 64 << 20          # conservative fallback (v7x physical VMEM)


# ---------------------------------------------------------------------------
# Forward wrapper
# ---------------------------------------------------------------------------
def fcae_forward(x, w_list, gb_list, *, extract=False, batch_tile=None):
    """x: (B, 192, 1) f32 -> (B, 192, 1) f32, or (B, 100, 1) if extract=True.

    The MXU operand dtype follows w_list's dtype.  Two execution paths:
      * fused whole-batch-resident kernel (grid-less) for small/medium B,
      * per-layer batch-tiled two-pass kernels when the resident footprint
        would exceed the per-generation VMEM cap (or batch_tile is given).
    """
    assert x.ndim == 3 and x.shape[-1] == 1 and x.shape[1] == ENC_DIMS[0]
    n_layers = 3 if extract else NUM_LAYERS
    w_list = list(w_list[:n_layers])
    gb_list = list(gb_list[:n_layers])
    matmul_dtype = w_list[0].dtype
    itemsz = matmul_dtype.itemsize
    out_feats = LAYER_DIMS[n_layers - 1][1]
    kin0, kout_last = KIN_PAD[0], KOUT_PAD[n_layers - 1]

    x2d = x[..., 0].astype(jnp.float32)
    B = x2d.shape[0]

    cap_usable = _vmem_capacity_bytes() // 8 * 7   # leave compiler headroom

    # Fused-path VMEM budget: params + in/out activations + live per-layer
    # intermediates (y, y*y, z, next x) of the unrolled body + slack.
    b8 = _round_up(B, 8)
    param_bytes = (sum(w.size * w.dtype.itemsize for w in w_list)
                   + sum(g.size * 4 for g in gb_list))
    fused_need = (param_bytes
                  + b8 * kin0 * itemsz + b8 * kout_last * 4
                  + 4 * b8 * max(KOUT_PAD[:n_layers]) * 4
                  + (4 << 20))

    use_tiled = (batch_tile is not None) or (fused_need > cap_usable)

    if not use_tiled:
        B_pad = b8
        x_pad = jnp.pad(x2d, ((0, B_pad - B), (0, kin0 - ENC_DIMS[0])))
        x_pad = x_pad.astype(matmul_dtype)
        kernel = functools.partial(
            _fcae_fused_kernel, n_layers=n_layers, final_tanh=not extract,
            inv_b=1.0 / B, matmul_dtype=matmul_dtype,
            mask_rows=B if B_pad != B else None)
        vmem = pl.BlockSpec(memory_space=pltpu.MemorySpace.VMEM)
        out = pl.pallas_call(
            kernel,
            out_shape=jax.ShapeDtypeStruct((B_pad, kout_last), jnp.float32),
            in_specs=[vmem] * (1 + 2 * n_layers),
            out_specs=vmem,
            compiler_params=pltpu.CompilerParams(
                vmem_limit_bytes=int(min(max(fused_need, 32 << 20),
                                         cap_usable))),
        )(x_pad, *w_list, *gb_list)
        return out[:B, :out_feats, None]

    # ---- batch-tiled two-pass path (per-layer pallas_call) ----
    tb = batch_tile if batch_tile is not None else 512
    tb = max(8, _round_up(min(tb, _round_up(B, 8)), 8))
    B_pad = _round_up(B, tb)
    n_bt = B_pad // tb

    h = jnp.pad(x2d, ((0, B_pad - B), (0, kin0 - ENC_DIMS[0])))
    h = h.astype(matmul_dtype)
    for i in range(n_layers):
        kin, kout = KIN_PAD[i], KOUT_PAD[i]
        is_last = i == n_layers - 1
        out_dtype = jnp.float32 if is_last else matmul_dtype
        kernel = functools.partial(
            _fc_bn_layer_kernel, inv_b=1.0 / B,
            final_tanh=(not extract) and is_last, batch_tile=tb,
            mask_rows=B if (B_pad != B and not is_last) else None)
        tile_need = (3 * tb * kin * itemsz + 3 * tb * kout * 4
                     + 2 * kin * kout * itemsz + 4 * tb * kout * 4 + (2 << 20))
        h = pl.pallas_call(
            kernel,
            out_shape=jax.ShapeDtypeStruct((B_pad, kout), out_dtype),
            grid_spec=pltpu.PrefetchScalarGridSpec(
                num_scalar_prefetch=0,
                grid=(2, n_bt),
                in_specs=[
                    pl.BlockSpec((tb, kin), lambda p, b: (b, 0)),
                    pl.BlockSpec((kin, kout), lambda p, b: (0, 0)),
                    pl.BlockSpec((8, kout), lambda p, b: (0, 0)),
                ],
                # Pass 0 (stats) pins the output block index to 0 so nothing
                # is written back; pass 1 (apply) walks every block.
                out_specs=pl.BlockSpec((tb, kout), lambda p, b: (b * p, 0)),
                scratch_shapes=[pltpu.VMEM((8, kout), jnp.float32)]),
            compiler_params=pltpu.CompilerParams(
                dimension_semantics=("arbitrary", "arbitrary"),
                vmem_limit_bytes=int(min(max(tile_need, 32 << 20),
                                         cap_usable))),
        )(h, w_list[i], gb_list[i])
    # TODO(synk): v7x core-parallel batch split with per-layer partial-stats
    # exchange (VMEM_SHARED + core_barrier).
    return h[:B, :out_feats, None]


# ---------------------------------------------------------------------------
# Pure-JAX reference (exact PyTorch forward semantics, bias included)
# ---------------------------------------------------------------------------
def fcae_reference(x, params, extract=False):
    """Training-mode BatchNorm1d (batch statistics, biased variance).
    Matmuls at HIGHEST precision so the reference itself is not silently
    degraded to bf16 by the TPU default matmul precision."""
    h = x[..., 0]
    n_layers = 3 if extract else NUM_LAYERS
    for i in range(n_layers):
        w, b, g, be = params[i]
        y = jnp.dot(h, w, precision=jax.lax.Precision.HIGHEST) + b
        mean = jnp.mean(y, axis=0, keepdims=True)
        var = jnp.mean((y - mean) ** 2, axis=0, keepdims=True)
        z = (y - mean) * lax.rsqrt(var + EPS) * g + be
        if (not extract) and i == n_layers - 1:
            h = jnp.tanh(z)
        else:
            h = jnp.maximum(z, 0.0)
    return h[..., None]


if __name__ == "__main__":
    key = jax.random.PRNGKey(0)
    kx, kx2, kx3, kp = jax.random.split(key, 4)
    params = init_params(kp)

    w_f32, gb_f32 = pack_params(params)                    # f32 MXU operands
    w_bf16, gb_bf16 = pack_params(params, use_bf16=True)   # bf16 operands

    fwd = jax.jit(fcae_forward, static_argnames=("extract", "batch_tile"))

    # Tolerances are loose enough to absorb XLA/Mosaic matmul-precision
    # differences across TPU generations; structural bugs give O(1) errors.

    # 1) Fused whole-batch path, f32 operands.
    B = 8
    x = jax.random.normal(kx, (B, ENC_DIMS[0], 1), jnp.float32)
    ref = fcae_reference(x, params)
    out = jax.block_until_ready(
        fwd(x, w_f32, gb_f32, extract=False, batch_tile=None))
    assert out.shape == (B, 192, 1), out.shape
    assert jnp.allclose(out, ref, atol=5e-2, rtol=5e-2), (
        float(jnp.max(jnp.abs(out - ref))))

    # 2) bf16 MXU operands (f32 accumulation): loose sanity check.
    out_bf16 = jax.block_until_ready(
        fwd(x, w_bf16, gb_bf16, extract=False, batch_tile=None))
    assert out_bf16.shape == (B, 192, 1), out_bf16.shape
    assert jnp.allclose(out_bf16, ref, atol=2e-1, rtol=2e-1), (
        float(jnp.max(jnp.abs(out_bf16 - ref))))

    # 3) Encoder-only latent extraction.
    lat = jax.block_until_ready(
        fwd(x, w_f32, gb_f32, extract=True, batch_tile=None))
    lat_ref = fcae_reference(x, params, extract=True)
    assert lat.shape == (B, 100, 1), lat.shape
    assert jnp.allclose(lat, lat_ref, atol=5e-2, rtol=5e-2), (
        float(jnp.max(jnp.abs(lat - lat_ref))))

    # 4) Batch-tiled two-pass path with a ragged batch (exercises the stats/
    #    apply grid passes and padded-row masking); tiny tile forces 2 tiles.
    B2 = 13
    x2 = jax.random.normal(kx2, (B2, ENC_DIMS[0], 1), jnp.float32)
    ref2 = fcae_reference(x2, params)
    out2 = jax.block_until_ready(
        fwd(x2, w_f32, gb_f32, extract=False, batch_tile=8))
    assert out2.shape == (B2, 192, 1), out2.shape
    assert jnp.allclose(out2, ref2, atol=5e-2, rtol=5e-2), (
        float(jnp.max(jnp.abs(out2 - ref2))))

    # 5) Fused path with B not a multiple of 8 (batch padding + row masking).
    B3 = 5
    x3 = jax.random.normal(kx3, (B3, ENC_DIMS[0], 1), jnp.float32)
    ref3 = fcae_reference(x3, params)
    out3 = jax.block_until_ready(
        fwd(x3, w_f32, gb_f32, extract=False, batch_tile=None))
    assert out3.shape == (B3, 192, 1), out3.shape
    assert jnp.allclose(out3, ref3, atol=5e-2, rtol=5e-2), (
        float(jnp.max(jnp.abs(out3 - ref3))))

    print("KERNEL_OK")
</pallas_src>

<mosaic_0001>
module attributes {stable_mosaic.version = 11 : i64} {
  func.func @_fcae_fused_kernel(%arg0: memref<8x256xf32, #tpu.memory_space<vmem>>, %arg1: memref<256x256xf32, #tpu.memory_space<vmem>>, %arg2: memref<256x128xf32, #tpu.memory_space<vmem>>, %arg3: memref<128x128xf32, #tpu.memory_space<vmem>>, %arg4: memref<128x128xf32, #tpu.memory_space<vmem>>, %arg5: memref<128x256xf32, #tpu.memory_space<vmem>>, %arg6: memref<256x256xf32, #tpu.memory_space<vmem>>, %arg7: memref<8x256xf32, #tpu.memory_space<vmem>>, %arg8: memref<8x128xf32, #tpu.memory_space<vmem>>, %arg9: memref<8x128xf32, #tpu.memory_space<vmem>>, %arg10: memref<8x128xf32, #tpu.memory_space<vmem>>, %arg11: memref<8x256xf32, #tpu.memory_space<vmem>>, %arg12: memref<8x256xf32, #tpu.memory_space<vmem>>, %arg13: memref<8x256xf32, #tpu.memory_space<vmem>>) attributes {dimension_semantics = [], scalar_prefetch = 0 : i64, scratch_operands = 0 : i64, tpu.core_type = #tpu.core_type<tc>} {
    %c0 = arith.constant 0 : index
    %c0_0 = arith.constant 0 : index
    %0 = vector.load %arg0[%c0, %c0_0] : memref<8x256xf32, #tpu.memory_space<vmem>>, vector<8x256xf32>
    %c0_1 = arith.constant 0 : index
    %c0_2 = arith.constant 0 : index
    %1 = vector.load %arg1[%c0_1, %c0_2] : memref<256x256xf32, #tpu.memory_space<vmem>>, vector<256x256xf32>
    %cst = arith.constant dense<0.000000e+00> : vector<8x256xf32>
    %2 = tpu.matmul %0, %1, %cst {dimension_numbers = #tpu.dot_dimension_numbers<[1], [0], [0], [1], [0, 0, 1, 1], [], []>} : vector<8x256xf32>, vector<256x256xf32>, vector<8x256xf32> -> vector<8x256xf32>
    %cst_3 = arith.constant dense<0.000000e+00> : vector<256xf32>
    %3 = vector.multi_reduction <add>, %2, %cst_3 [0] : vector<8x256xf32> to vector<256xf32>
    %4 = vector.shape_cast %3 : vector<256xf32> to vector<1x256xf32>
    %cst_4 = arith.constant 1.250000e-01 : f32
    %5 = vector.broadcast %cst_4 : f32 to vector<1x256xf32>
    %6 = arith.mulf %4, %5 : vector<1x256xf32>
    %7 = arith.mulf %2, %2 : vector<8x256xf32>
    %cst_5 = arith.constant dense<0.000000e+00> : vector<256xf32>
    %8 = vector.multi_reduction <add>, %7, %cst_5 [0] : vector<8x256xf32> to vector<256xf32>
    %9 = vector.shape_cast %8 : vector<256xf32> to vector<1x256xf32>
    %cst_6 = arith.constant 1.250000e-01 : f32
    %10 = vector.broadcast %cst_6 : f32 to vector<1x256xf32>
    %11 = arith.mulf %9, %10 : vector<1x256xf32>
    %12 = arith.mulf %6, %6 : vector<1x256xf32>
    %13 = arith.subf %11, %12 : vector<1x256xf32>
    %cst_7 = arith.constant 0.000000e+00 : f32
    %14 = vector.broadcast %cst_7 : f32 to vector<1x256xf32>
    %15 = arith.maximumf %13, %14 : vector<1x256xf32>
    %c0_8 = arith.constant 0 : index
    %c0_9 = arith.constant 0 : index
    %16 = vector.load %arg7[%c0_8, %c0_9] : memref<8x256xf32, #tpu.memory_space<vmem>>, vector<1x256xf32>
    %cst_10 = arith.constant 9.99999974E-6 : f32
    %17 = vector.broadcast %cst_10 : f32 to vector<1x256xf32>
    %18 = arith.addf %15, %17 : vector<1x256xf32>
    %19 = math.rsqrt %18 : vector<1x256xf32>
    %20 = arith.mulf %16, %19 : vector<1x256xf32>
    %c1 = arith.constant 1 : index
    %c0_11 = arith.constant 0 : index
    %21 = vector.load %arg7[%c1, %c0_11] : memref<8x256xf32, #tpu.memory_space<vmem>>, vector<1x256xf32>
    %22 = arith.mulf %6, %20 : vector<1x256xf32>
    %23 = arith.subf %21, %22 : vector<1x256xf32>
    %24 = vector.broadcast %20 : vector<1x256xf32> to vector<8x256xf32>
    %25 = arith.mulf %2, %24 : vector<8x256xf32>
    %26 = vector.broadcast %23 : vector<1x256xf32> to vector<8x256xf32>
    %27 = arith.addf %25, %26 : vector<8x256xf32>
    %cst_12 = arith.constant 0.000000e+00 : f32
    %28 = vector.broadcast %cst_12 : f32 to vector<8x256xf32>
    %29 = arith.maximumf %27, %28 : vector<8x256xf32>
    %c0_13 = arith.constant 0 : index
    %c0_14 = arith.constant 0 : index
    %30 = vector.load %arg2[%c0_13, %c0_14] : memref<256x128xf32, #tpu.memory_space<vmem>>, vector<256x128xf32>
    %cst_15 = arith.constant dense<0.000000e+00> : vector<8x128xf32>
    %31 = tpu.matmul %29, %30, %cst_15 {dimension_numbers = #tpu.dot_dimension_numbers<[1], [0], [0], [1], [0, 0, 1, 1], [], []>} : vector<8x256xf32>, vector<256x128xf32>, vector<8x128xf32> -> vector<8x128xf32>
    %cst_16 = arith.constant dense<0.000000e+00> : vector<128xf32>
    %32 = vector.multi_reduction <add>, %31, %cst_16 [0] : vector<8x128xf32> to vector<128xf32>
    %33 = vector.shape_cast %32 : vector<128xf32> to vector<1x128xf32>
    %cst_17 = arith.constant 1.250000e-01 : f32
    %34 = vector.broadcast %cst_17 : f32 to vector<1x128xf32>
    %35 = arith.mulf %33, %34 : vector<1x128xf32>
    %36 = arith.mulf %31, %31 : vector<8x128xf32>
    %cst_18 = arith.constant dense<0.000000e+00> : vector<128xf32>
    %37 = vector.multi_reduction <add>, %36, %cst_18 [0] : vector<8x128xf32> to vector<128xf32>
    %38 = vector.shape_cast %37 : vector<128xf32> to vector<1x128xf32>
    %cst_19 = arith.constant 1.250000e-01 : f32
    %39 = vector.broadcast %cst_19 : f32 to vector<1x128xf32>
    %40 = arith.mulf %38, %39 : vector<1x128xf32>
    %41 = arith.mulf %35, %35 : vector<1x128xf32>
    %42 = arith.subf %40, %41 : vector<1x128xf32>
    %cst_20 = arith.constant 0.000000e+00 : f32
    %43 = vector.broadcast %cst_20 : f32 to vector<1x128xf32>
    %44 = arith.maximumf %42, %43 : vector<1x128xf32>
    %c0_21 = arith.constant 0 : index
    %c0_22 = arith.constant 0 : index
    %45 = vector.load %arg8[%c0_21, %c0_22] : memref<8x128xf32, #tpu.memory_space<vmem>>, vector<1x128xf32>
    %cst_23 = arith.constant 9.99999974E-6 : f32
    %46 = vector.broadcast %cst_23 : f32 to vector<1x128xf32>
    %47 = arith.addf %44, %46 : vector<1x128xf32>
    %48 = math.rsqrt %47 : vector<1x128xf32>
    %49 = arith.mulf %45, %48 : vector<1x128xf32>
    %c1_24 = arith.constant 1 : index
    %c0_25 = arith.constant 0 : index
    %50 = vector.load %arg8[%c1_24, %c0_25] : memref<8x128xf32, #tpu.memory_space<vmem>>, vector<1x128xf32>
    %51 = arith.mulf %35, %49 : vector<1x128xf32>
    %52 = arith.subf %50, %51 : vector<1x128xf32>
    %53 = vector.broadcast %49 : vector<1x128xf32> to vector<8x128xf32>
    %54 = arith.mulf %31, %53 : vector<8x128xf32>
    %55 = vector.broadcast %52 : vector<1x128xf32> to vector<8x128xf32>
    %56 = arith.addf %54, %55 : vector<8x128xf32>
    %cst_26 = arith.constant 0.000000e+00 : f32
    %57 = vector.broadcast %cst_26 : f32 to vector<8x128xf32>
    %58 = arith.maximumf %56, %57 : vector<8x128xf32>
    %c0_27 = arith.constant 0 : index
    %c0_28 = arith.constant 0 : index
    %59 = vector.load %arg3[%c0_27, %c0_28] : memref<128x128xf32, #tpu.memory_space<vmem>>, vector<128x128xf32>
    %cst_29 = arith.constant dense<0.000000e+00> : vector<8x128xf32>
    %60 = tpu.matmul %58, %59, %cst_29 {dimension_numbers = #tpu.dot_dimension_numbers<[1], [0], [0], [1], [0, 0, 1, 1], [], []>} : vector<8x128xf32>, vector<128x128xf32>, vector<8x128xf32> -> vector<8x128xf32>
    %cst_30 = arith.constant dense<0.000000e+00> : vector<128xf32>
    %61 = vector.multi_reduction <add>, %60, %cst_30 [0] : vector<8x128xf32> to vector<128xf32>
    %62 = vector.shape_cast %61 : vector<128xf32> to vector<1x128xf32>
    %cst_31 = arith.constant 1.250000e-01 : f32
    %63 = vector.broadcast %cst_31 : f32 to vector<1x128xf32>
    %64 = arith.mulf %62, %63 : vector<1x128xf32>
    %65 = arith.mulf %60, %60 : vector<8x128xf32>
    %cst_32 = arith.constant dense<0.000000e+00> : vector<128xf32>
    %66 = vector.multi_reduction <add>, %65, %cst_32 [0] : vector<8x128xf32> to vector<128xf32>
    %67 = vector.shape_cast %66 : vector<128xf32> to vector<1x128xf32>
    %cst_33 = arith.constant 1.250000e-01 : f32
    %68 = vector.broadcast %cst_33 : f32 to vector<1x128xf32>
    %69 = arith.mulf %67, %68 : vector<1x128xf32>
    %70 = arith.mulf %64, %64 : vector<1x128xf32>
    %71 = arith.subf %69, %70 : vector<1x128xf32>
    %cst_34 = arith.constant 0.000000e+00 : f32
    %72 = vector.broadcast %cst_34 : f32 to vector<1x128xf32>
    %73 = arith.maximumf %71, %72 : vector<1x128xf32>
    %c0_35 = arith.constant 0 : index
    %c0_36 = arith.constant 0 : index
    %74 = vector.load %arg9[%c0_35, %c0_36] : memref<8x128xf32, #tpu.memory_space<vmem>>, vector<1x128xf32>
    %cst_37 = arith.constant 9.99999974E-6 : f32
    %75 = vector.broadcast %cst_37 : f32 to vector<1x128xf32>
    %76 = arith.addf %73, %75 : vector<1x128xf32>
    %77 = math.rsqrt %76 : vector<1x128xf32>
    %78 = arith.mulf %74, %77 : vector<1x128xf32>
    %c1_38 = arith.constant 1 : index
    %c0_39 = arith.constant 0 : index
    %79 = vector.load %arg9[%c1_38, %c0_39] : memref<8x128xf32, #tpu.memory_space<vmem>>, vector<1x128xf32>
    %80 = arith.mulf %64, %78 : vector<1x128xf32>
    %81 = arith.subf %79, %80 : vector<1x128xf32>
    %82 = vector.broadcast %78 : vector<1x128xf32> to vector<8x128xf32>
    %83 = arith.mulf %60, %82 : vector<8x128xf32>
    %84 = vector.broadcast %81 : vector<1x128xf32> to vector<8x128xf32>
    %85 = arith.addf %83, %84 : vector<8x128xf32>
    %cst_40 = arith.constant 0.000000e+00 : f32
    %86 = vector.broadcast %cst_40 : f32 to vector<8x128xf32>
    %87 = arith.maximumf %85, %86 : vector<8x128xf32>
    %c0_41 = arith.constant 0 : index
    %c0_42 = arith.constant 0 : index
    %88 = vector.load %arg4[%c0_41, %c0_42] : memref<128x128xf32, #tpu.memory_space<vmem>>, vector<128x128xf32>
    %cst_43 = arith.constant dense<0.000000e+00> : vector<8x128xf32>
    %89 = tpu.matmul %87, %88, %cst_43 {dimension_numbers = #tpu.dot_dimension_numbers<[1], [0], [0], [1], [0, 0, 1, 1], [], []>} : vector<8x128xf32>, vector<128x128xf32>, vector<8x128xf32> -> vector<8x128xf32>
    %cst_44 = arith.constant dense<0.000000e+00> : vector<128xf32>
    %90 = vector.multi_reduction <add>, %89, %cst_44 [0] : vector<8x128xf32> to vector<128xf32>
    %91 = vector.shape_cast %90 : vector<128xf32> to vector<1x128xf32>
    %cst_45 = arith.constant 1.250000e-01 : f32
    %92 = vector.broadcast %cst_45 : f32 to vector<1x128xf32>
    %93 = arith.mulf %91, %92 : vector<1x128xf32>
    %94 = arith.mulf %89, %89 : vector<8x128xf32>
    %cst_46 = arith.constant dense<0.000000e+00> : vector<128xf32>
    %95 = vector.multi_reduction <add>, %94, %cst_46 [0] : vector<8x128xf32> to vector<128xf32>
    %96 = vector.shape_cast %95 : vector<128xf32> to vector<1x128xf32>
    %cst_47 = arith.constant 1.250000e-01 : f32
    %97 = vector.broadcast %cst_47 : f32 to vector<1x128xf32>
    %98 = arith.mulf %96, %97 : vector<1x128xf32>
    %99 = arith.mulf %93, %93 : vector<1x128xf32>
    %100 = arith.subf %98, %99 : vector<1x128xf32>
    %cst_48 = arith.constant 0.000000e+00 : f32
    %101 = vector.broadcast %cst_48 : f32 to vector<1x128xf32>
    %102 = arith.maximumf %100, %101 : vector<1x128xf32>
    %c0_49 = arith.constant 0 : index
    %c0_50 = arith.constant 0 : index
    %103 = vector.load %arg10[%c0_49, %c0_50] : memref<8x128xf32, #tpu.memory_space<vmem>>, vector<1x128xf32>
    %cst_51 = arith.constant 9.99999974E-6 : f32
    %104 = vector.broadcast %cst_51 : f32 to vector<1x128xf32>
    %105 = arith.addf %102, %104 : vector<1x128xf32>
    %106 = math.rsqrt %105 : vector<1x128xf32>
    %107 = arith.mulf %103, %106 : vector<1x128xf32>
    %c1_52 = arith.constant 1 : index
    %c0_53 = arith.constant 0 : index
    %108 = vector.load %arg10[%c1_52, %c0_53] : memref<8x128xf32, #tpu.memory_space<vmem>>, vector<1x128xf32>
    %109 = arith.mulf %93, %107 : vector<1x128xf32>
    %110 = arith.subf %108, %109 : vector<1x128xf32>
    %111 = vector.broadcast %107 : vector<1x128xf32> to vector<8x128xf32>
    %112 = arith.mulf %89, %111 : vector<8x128xf32>
    %113 = vector.broadcast %110 : vector<1x128xf32> to vector<8x128xf32>
    %114 = arith.addf %112, %113 : vector<8x128xf32>
    %cst_54 = arith.constant 0.000000e+00 : f32
    %115 = vector.broadcast %cst_54 : f32 to vector<8x128xf32>
    %116 = arith.maximumf %114, %115 : vector<8x128xf32>
    %c0_55 = arith.constant 0 : index
    %c0_56 = arith.constant 0 : index
    %117 = vector.load %arg5[%c0_55, %c0_56] : memref<128x256xf32, #tpu.memory_space<vmem>>, vector<128x256xf32>
    %cst_57 = arith.constant dense<0.000000e+00> : vector<8x256xf32>
    %118 = tpu.matmul %116, %117, %cst_57 {dimension_numbers = #tpu.dot_dimension_numbers<[1], [0], [0], [1], [0, 0, 1, 1], [], []>} : vector<8x128xf32>, vector<128x256xf32>, vector<8x256xf32> -> vector<8x256xf32>
    %cst_58 = arith.constant dense<0.000000e+00> : vector<256xf32>
    %119 = vector.multi_reduction <add>, %118, %cst_58 [0] : vector<8x256xf32> to vector<256xf32>
    %120 = vector.shape_cast %119 : vector<256xf32> to vector<1x256xf32>
    %cst_59 = arith.constant 1.250000e-01 : f32
    %121 = vector.broadcast %cst_59 : f32 to vector<1x256xf32>
    %122 = arith.mulf %120, %121 : vector<1x256xf32>
    %123 = arith.mulf %118, %118 : vector<8x256xf32>
    %cst_60 = arith.constant dense<0.000000e+00> : vector<256xf32>
    %124 = vector.multi_reduction <add>, %123, %cst_60 [0] : vector<8x256xf32> to vector<256xf32>
    %125 = vector.shape_cast %124 : vector<256xf32> to vector<1x256xf32>
    %cst_61 = arith.constant 1.250000e-01 : f32
    %126 = vector.broadcast %cst_61 : f32 to vector<1x256xf32>
    %127 = arith.mulf %125, %126 : vector<1x256xf32>
    %128 = arith.mulf %122, %122 : vector<1x256xf32>
    %129 = arith.subf %127, %128 : vector<1x256xf32>
    %cst_62 = arith.constant 0.000000e+00 : f32
    %130 = vector.broadcast %cst_62 : f32 to vector<1x256xf32>
    %131 = arith.maximumf %129, %130 : vector<1x256xf32>
    %c0_63 = arith.constant 0 : index
    %c0_64 = arith.constant 0 : index
    %132 = vector.load %arg11[%c0_63, %c0_64] : memref<8x256xf32, #tpu.memory_space<vmem>>, vector<1x256xf32>
    %cst_65 = arith.constant 9.99999974E-6 : f32
    %133 = vector.broadcast %cst_65 : f32 to vector<1x256xf32>
    %134 = arith.addf %131, %133 : vector<1x256xf32>
    %135 = math.rsqrt %134 : vector<1x256xf32>
    %136 = arith.mulf %132, %135 : vector<1x256xf32>
    %c1_66 = arith.constant 1 : index
    %c0_67 = arith.constant 0 : index
    %137 = vector.load %arg11[%c1_66, %c0_67] : memref<8x256xf32, #tpu.memory_space<vmem>>, vector<1x256xf32>
    %138 = arith.mulf %122, %136 : vector<1x256xf32>
    %139 = arith.subf %137, %138 : vector<1x256xf32>
    %140 = vector.broadcast %136 : vector<1x256xf32> to vector<8x256xf32>
    %141 = arith.mulf %118, %140 : vector<8x256xf32>
    %142 = vector.broadcast %139 : vector<1x256xf32> to vector<8x256xf32>
    %143 = arith.addf %141, %142 : vector<8x256xf32>
    %cst_68 = arith.constant 0.000000e+00 : f32
    %144 = vector.broadcast %cst_68 : f32 to vector<8x256xf32>
    %145 = arith.maximumf %143, %144 : vector<8x256xf32>
    %c0_69 = arith.constant 0 : index
    %c0_70 = arith.constant 0 : index
    %146 = vector.load %arg6[%c0_69, %c0_70] : memref<256x256xf32, #tpu.memory_space<vmem>>, vector<256x256xf32>
    %cst_71 = arith.constant dense<0.000000e+00> : vector<8x256xf32>
    %147 = tpu.matmul %145, %146, %cst_71 {dimension_numbers = #tpu.dot_dimension_numbers<[1], [0], [0], [1], [0, 0, 1, 1], [], []>} : vector<8x256xf32>, vector<256x256xf32>, vector<8x256xf32> -> vector<8x256xf32>
    %cst_72 = arith.constant dense<0.000000e+00> : vector<256xf32>
    %148 = vector.multi_reduction <add>, %147, %cst_72 [0] : vector<8x256xf32> to vector<256xf32>
    %149 = vector.shape_cast %148 : vector<256xf32> to vector<1x256xf32>
    %cst_73 = arith.constant 1.250000e-01 : f32
    %150 = vector.broadcast %cst_73 : f32 to vector<1x256xf32>
    %151 = arith.mulf %149, %150 : vector<1x256xf32>
    %152 = arith.mulf %147, %147 : vector<8x256xf32>
    %cst_74 = arith.constant dense<0.000000e+00> : vector<256xf32>
    %153 = vector.multi_reduction <add>, %152, %cst_74 [0] : vector<8x256xf32> to vector<256xf32>
    %154 = vector.shape_cast %153 : vector<256xf32> to vector<1x256xf32>
    %cst_75 = arith.constant 1.250000e-01 : f32
    %155 = vector.broadcast %cst_75 : f32 to vector<1x256xf32>
    %156 = arith.mulf %154, %155 : vector<1x256xf32>
    %157 = arith.mulf %151, %151 : vector<1x256xf32>
    %158 = arith.subf %156, %157 : vector<1x256xf32>
    %cst_76 = arith.constant 0.000000e+00 : f32
    %159 = vector.broadcast %cst_76 : f32 to vector<1x256xf32>
    %160 = arith.maximumf %158, %159 : vector<1x256xf32>
    %c0_77 = arith.constant 0 : index
    %c0_78 = arith.constant 0 : index
    %161 = vector.load %arg12[%c0_77, %c0_78] : memref<8x256xf32, #tpu.memory_space<vmem>>, vector<1x256xf32>
    %cst_79 = arith.constant 9.99999974E-6 : f32
    %162 = vector.broadcast %cst_79 : f32 to vector<1x256xf32>
    %163 = arith.addf %160, %162 : vector<1x256xf32>
    %164 = math.rsqrt %163 : vector<1x256xf32>
    %165 = arith.mulf %161, %164 : vector<1x256xf32>
    %c1_80 = arith.constant 1 : index
    %c0_81 = arith.constant 0 : index
    %166 = vector.load %arg12[%c1_80, %c0_81] : memref<8x256xf32, #tpu.memory_space<vmem>>, vector<1x256xf32>
    %167 = arith.mulf %151, %165 : vector<1x256xf32>
    %168 = arith.subf %166, %167 : vector<1x256xf32>
    %169 = vector.broadcast %165 : vector<1x256xf32> to vector<8x256xf32>
    %170 = arith.mulf %147, %169 : vector<8x256xf32>
    %171 = vector.broadcast %168 : vector<1x256xf32> to vector<8x256xf32>
    %172 = arith.addf %170, %171 : vector<8x256xf32>
    %173 = math.tanh %172 : vector<8x256xf32>
    %c0_82 = arith.constant 0 : index
    %c0_83 = arith.constant 0 : index
    %174 = vector.load %arg13[%c0_82, %c0_83] : memref<8x256xf32, #tpu.memory_space<vmem>>, vector<8x256xf32>
    tpu.vector_store %arg13[%c0_82, %c0_83], %173 {strides = array<i32>} : memref<8x256xf32, #tpu.memory_space<vmem>>, vector<8x256xf32>,
    return
  }
}

</mosaic_0001>

<bundles_post_ra>
// kernel: fcae_forward.1
= control target key start
LH: loop header
LB: loop body
LE: loop exit
PB: predicated region body
PF: predicated region fallthrough
CT: control target
= control target key end

     0   :  { %18 = vsyncpa [#allocation3], 0  ;;  %s1785_s0 = inlined_call_operand.vmem [shape: f32[8,256], index: 0, kind: input, shape index: {}]   ;;  %s1786_s1 = inlined_call_operand.hbm [shape: f32[256,256], index: 1, kind: input, shape index: {}]   ;;  %s1787_s2 = inlined_call_operand.hbm [shape: f32[256,128], index: 2, kind: input, shape index: {}]   ;;  %s1788_s3 = inlined_call_operand.hbm [shape: f32[128,128], index: 3, kind: input, shape index: {}]   ;;  %s1789_s4 = inlined_call_operand.hbm [shape: f32[128,128], index: 4, kind: input, shape index: {}]   ;;  %s1790_s5 = inlined_call_operand.hbm [shape: f32[128,256], index: 5, kind: input, shape index: {}]   ;;  %s1791_s6 = inlined_call_operand.hbm [shape: f32[256,256], index: 6, kind: input, shape index: {}]   ;;  %s1792_s7 = inlined_call_operand.vmem [shape: f32[8,256], index: 7, kind: input, shape index: {}]   ;;  %s1793_s8 = inlined_call_operand.vmem [shape: f32[8,128], index: 8, kind: input, shape index: {}]   ;;  %s1794_s9 = inlined_call_operand.vmem [shape: f32[8,128], index: 9, kind: input, shape index: {}]   ;;  %s1795_s10 = inlined_call_operand.vmem [shape: f32[8,128], index: 10, kind: input, shape index: {}]   ;;  %s1796_s11 = inlined_call_operand.vmem [shape: f32[8,256], index: 11, kind: input, shape index: {}]   ;;  %s1797_s12 = inlined_call_operand.vmem [shape: f32[8,256], index: 12, kind: input, shape index: {}]   ;;  %s1798_s13 = inlined_call_operand.vmem [shape: f32[8,256], index: 13, kind: output, shape index: {}]  }
   0x1   :  { %19 = vsyncpa [#allocation5], 0 }
   0x2   :  { %20 = vsyncpa [#allocation8], 0 }
   0x3   :  { %21 = vsyncpa [#allocation11], 0  ;;  %s1531_s25 = smov [#allocation4]  }
   0x4   :  { %s41_s26 = sshll.u32 %s1531_s25, 4  ;;  %s42_s26 = int_to_ptr.vmem [resolvable:$true] %s41_s26 }
   0x5   :  { %s1411_s27 = scalar_lea.vmem %s42_s26, 4096  ;;  %p1416_p1 = scmp.lt.s32.totalorder %s42_s26, %s42_s26 }
   0x6   :  { %p1412_p0 = scmp.ne.s32.totalorder %s42_s26, %s1411_s27  ;;  %p1417_p2 = scmp.lt.s32.totalorder %s1411_s27, %s1411_s27 }
   0x8   :  { %p1418_p3 = por %p1417_p2, %p1416_p1 }
   0xa   :  { %p1419_p4 = pnand %p1418_p3, %p1412_p0 }
   0xc   :  { %1422 = shalt.err (!%p1419_p4)
}
   0xd   :  { %s1532_s28 = smov 128   ;;  %s1533_s29 = smov 8  }
   0xe   :  { %47 = dma.hbm_to_vmem [thread:$0]  %s1787_s2, 4096, %s42_s26, [#allocation5], %s1532_s28, %s1532_s28, %s1533_s29  }
   0xf   :  { %s1534_s15 = smov [#allocation7]   ;;  %s1535_s17 = smov [#allocation2]  }
  0x10   :  { %s65_s16 = sshll.u32 %s1534_s15, 4  ;;  %s29_s18 = sshll.u32 %s1535_s17, 4  ;;  %s66_s16 = int_to_ptr.vmem [resolvable:$true] %s65_s16  ;;  %s30_s18 = int_to_ptr.vmem [resolvable:$true] %s29_s18 }
  0x11   :  { %s1431_s19 = scalar_lea.vmem %s66_s16, 2048  ;;  %p1436_p6 = scmp.lt.s32.totalorder %s66_s16, %s66_s16 }
  0x12   :  { %p1432_p5 = scmp.ne.s32.totalorder %s66_s16, %s1431_s19  ;;  %p1437_p7 = scmp.lt.s32.totalorder %s1431_s19, %s1431_s19 }
  0x14   :  { %p1438_p8 = por %p1437_p7, %p1436_p6 }
  0x16   :  { %p1439_p9 = pnand %p1438_p8, %p1432_p5 }
  0x18   :  { %1442 = shalt.err (!%p1439_p9)
}
  0x19   :  { %71 = dma.hbm_to_vmem [thread:$0]  %s1789_s4, 2048, %s66_s16, [#allocation8], %s1532_s28, %s1532_s28, %s1533_s29  }
  0x1a   :  { %s1451_s2 = scalar_lea.vmem %s30_s18, 8192  ;;  %p1456_p11 = scmp.lt.s32.totalorder %s30_s18, %s30_s18 }
  0x1b   :  { %p1452_p10 = scmp.ne.s32.totalorder %s30_s18, %s1451_s2  ;;  %p1457_p12 = scmp.lt.s32.totalorder %s1451_s2, %s1451_s2 }
  0x1d   :  { %p1458_p13 = por %p1457_p12, %p1456_p11 }
  0x1f   :  { %p1459_p0 = pnand %p1458_p13, %p1452_p10 }
  0x21   :  { %1462 = shalt.err (!%p1459_p0)
}
  0x22   :  { %s1536_s22 = smov 256   ;;  %s1537_s23 = smov 16  }
  0x23   :  { %35 = dma.hbm_to_vmem [thread:$0]  %s1786_s1, 8192, %s30_s18, [#allocation3], %s1536_s22, %s1536_s22, %s1537_s23  }
  0x24   :  { %s1538_s26 = smov [#allocation6]   ;;  %s1539_s4 = smov [#allocation9]  }
  0x25   :  { %s53_s27 = sshll.u32 %s1538_s26, 4  ;;  %s77_s30 = sshll.u32 %s1539_s4, 4  ;;  %s54_s27 = int_to_ptr.vmem [resolvable:$true] %s53_s27  ;;  %s78_s30 = int_to_ptr.vmem [resolvable:$true] %s77_s30 }
  0x26   :  { %s1471_s14 = scalar_lea.vmem %s54_s27, 2048  ;;  %p1476_p2 = scmp.lt.s32.totalorder %s54_s27, %s54_s27 }
  0x27   :  { %p1472_p1 = scmp.ne.s32.totalorder %s54_s27, %s1471_s14  ;;  %p1477_p3 = scmp.lt.s32.totalorder %s1471_s14, %s1471_s14 }
  0x29   :  { %p1478_p4 = por %p1477_p3, %p1476_p2 }
  0x2b   :  { %p1479_p5 = pnand %p1478_p4, %p1472_p1 }
  0x2d   :  { %1482 = shalt.err (!%p1479_p5)
}
  0x2e   :  { %59 = dma.hbm_to_vmem [thread:$0]  %s1788_s3, 2048, %s54_s27, [#allocation5], %s1532_s28, %s1532_s28, %s1533_s29  }
  0x2f   :  { %s1491_s1 = scalar_lea.vmem %s78_s30, 4096  ;;  %p1496_p7 = scmp.lt.s32.totalorder %s78_s30, %s78_s30 }
  0x30   :  { %p1492_p6 = scmp.ne.s32.totalorder %s78_s30, %s1491_s1  ;;  %p1497_p8 = scmp.lt.s32.totalorder %s1491_s1, %s1491_s1 }
  0x32   :  { %p1498_p9 = por %p1497_p8, %p1496_p7 }
  0x34   :  { %p1499_p10 = pnand %p1498_p9, %p1492_p6 }
  0x36   :  { %1502 = shalt.err (!%p1499_p10)
}
  0x37   :  { %83 = dma.hbm_to_vmem [thread:$0]  %s1790_s5, 4096, %s78_s30, [#allocation8], %s1536_s22, %s1536_s22, %s1537_s23  }
  0x38   :  { %s1540_s19 = smov [#allocation10]  }
  0x39   :  { %s89_s20 = sshll.u32 %s1540_s19, 4  ;;  %s90_s20 = int_to_ptr.vmem [resolvable:$true] %s89_s20 }
  0x3a   :  { %s1511_s21 = scalar_lea.vmem %s90_s20, 8192  ;;  %p1516_p12 = scmp.lt.s32.totalorder %s90_s20, %s90_s20 }
  0x3b   :  { %p1512_p11 = scmp.ne.s32.totalorder %s90_s20, %s1511_s21  ;;  %p1517_p13 = scmp.lt.s32.totalorder %s1511_s21, %s1511_s21 }
  0x3d   :  { %p1518_p0 = por %p1517_p13, %p1516_p12 }
  0x3f   :  { %p1519_p1 = pnand %p1518_p0, %p1512_p11 }
  0x41   :  { %1522 = shalt.err (!%p1519_p1)
}
  0x42   :  { %95 = dma.hbm_to_vmem [thread:$0]  %s1791_s6, 8192, %s90_s20, [#allocation11], %s1536_s22, %s1536_s22, %s1537_s23  }
  0x43   :  { %1523 = dma.done.wait [#allocation3], 8192  }
  0x44   :  { %1524 = vsyncadd [#allocation3], 4294959104 }
  0x45   :  { %1525 = dma.done.wait [#allocation5], 6144  }
  0x46   :  { %1526 = vsyncadd [#allocation5], 4294961152 }
  0x47   :  { %1527 = dma.done.wait [#allocation8], 6144  }
  0x48   :  { %1528 = vsyncadd [#allocation8], 4294961152 }
  0x49   :  { %1529 = dma.done.wait [#allocation11], 8192  }
  0x4a   :  { %1530 = vsyncadd [#allocation11], 4294959104  ;;  %v159_v0 = vld [vmem:[#allocation2 + $0xf8] sm:$0xff]  ;;  %v158_v1 = vld [vmem:[#allocation2 + $0xf0] sm:$0xff]  ;;  %vm1543_vm0 = vmmov 0  }
  0x4b   :  { %v157_v2 = vld [vmem:[#allocation2 + $0xe8] sm:$0xff]  ;;  %192 = vmatprep.subr.mxu0 %v159_v0  ;;  %v156_v3 = vld [vmem:[#allocation2 + $0xe0] sm:$0xff]  ;;  %v155_v4 = vld [vmem:[#allocation2 + $0xd8] sm:$0xff] }
  0x4c   :  { %193 = vmatpush1.msra.mxu0 %v158_v1  ;;  %v154_v5 = vld [vmem:[#allocation2 + $0xd0] sm:$0xff]  ;;  %v153_v6 = vld [vmem:[#allocation2 + $0xc8] sm:$0xff]  ;;  %v152_v7 = vld [vmem:[#allocation2 + $0xc0] sm:$0xff] }
  0x4d   :  { %194 = vmatprep.subr.mxu0 %v157_v2  ;;  %v151_v8 = vld [vmem:[#allocation2 + $0xb8] sm:$0xff]  ;;  %v150_v9 = vld [vmem:[#allocation2 + $0xb0] sm:$0xff]  ;;  %v149_v10 = vld [vmem:[#allocation2 + $0xa8] sm:$0xff] }
  0x4e   :  { %195 = vmatpush1.msra.mxu0 %v156_v3  ;;  %v148_v11 = vld [vmem:[#allocation2 + $0xa0] sm:$0xff]  ;;  %v147_v12 = vld [vmem:[#allocation2 + $0x98] sm:$0xff]  ;;  %v146_v13 = vld [vmem:[#allocation2 + $0x90] sm:$0xff] }
  0x4f   :  { %196 = vmatprep.subr.mxu0 %v155_v4  ;;  %v145_v14 = vld [vmem:[#allocation2 + $0x88] sm:$0xff]  ;;  %v144_v15 = vld [vmem:[#allocation2 + $0x80] sm:$0xff]  ;;  %v143_v16 = vld [vmem:[#allocation2 + $0x78] sm:$0xff] }
  0x50   :  { %197 = vmatpush1.msra.mxu0 %v154_v5  ;;  %v142_v17 = vld [vmem:[#allocation2 + $0x70] sm:$0xff]  ;;  %v141_v18 = vld [vmem:[#allocation2 + $0x68] sm:$0xff]  ;;  %v140_v19 = vld [vmem:[#allocation2 + $0x60] sm:$0xff] }
  0x51   :  { %198 = vmatprep.subr.mxu0 %v153_v6  ;;  %v139_v20 = vld [vmem:[#allocation2 + $0x58] sm:$0xff]  ;;  %v138_v21 = vld [vmem:[#allocation2 + $0x50] sm:$0xff]  ;;  %v137_v22 = vld [vmem:[#allocation2 + $0x48] sm:$0xff] }
  0x52   :  { %199 = vmatpush1.msra.mxu0 %v152_v7  ;;  %v136_v23 = vld [vmem:[#allocation2 + $0x40] sm:$0xff]  ;;  %v127_v24 = vld [vmem:[%s1785_s0 + $0x8] sm:$0xff]  ;;  %v135_v25 = vld [vmem:[#allocation2 + $0x38] sm:$0xff] }
  0x53   :  { %200 = vmatprep.subr.mxu0 %v151_v8  ;;  %256 = vmatprep.mubr.f32.mxu0 %v127_v24  ;;  %v134_v26 = vld [vmem:[#allocation2 + $0x30] sm:$0xff]  ;;  %v133_v27 = vld [vmem:[#allocation2 + $0x28] sm:$0xff]  ;;  %v132_v28 = vld [vmem:[#allocation2 + $0x20] sm:$0xff] }
  0x54   :  { %201 = vmatpush1.msra.mxu0 %v150_v9  ;;  %v131_v29 = vld [vmem:[#allocation2 + $0x18] sm:$0xff]  ;;  %v130_v30 = vld [vmem:[#allocation2 + $0x10] sm:$0xff]  ;;  %v129_v31 = vld [vmem:[#allocation2 + $0x8] sm:$0xff] }
  0x55   :  { %202 = vmatprep.subr.mxu0 %v149_v10  ;;  %v128_v32 = vld [vmem:[#allocation2] sm:$0xff]  ;;  %v191_v33 = vld [vmem:[#allocation2 + $0x1f8] sm:$0xff]  ;;  %v190_v34 = vld [vmem:[#allocation2 + $0x1f0] sm:$0xff] }
  0x56   :  { %203 = vmatpush1.msra.mxu0 %v148_v11  ;;  %v189_v35 = vld [vmem:[#allocation2 + $0x1e8] sm:$0xff]  ;;  %v188_v36 = vld [vmem:[#allocation2 + $0x1e0] sm:$0xff]  ;;  %v187_v37 = vld [vmem:[#allocation2 + $0x1d8] sm:$0xff] }
  0x57   :  { %204 = vmatprep.subr.mxu0 %v147_v12  ;;  %v186_v38 = vld [vmem:[#allocation2 + $0x1d0] sm:$0xff]  ;;  %v185_v39 = vld [vmem:[#allocation2 + $0x1c8] sm:$0xff]  ;;  %v184_v40 = vld [vmem:[#allocation2 + $0x1c0] sm:$0xff] }
  0x58   :  { %205 = vmatpush1.msra.mxu0 %v146_v13  ;;  %v183_v41 = vld [vmem:[#allocation2 + $0x1b8] sm:$0xff]  ;;  %v182_v42 = vld [vmem:[#allocation2 + $0x1b0] sm:$0xff]  ;;  %v181_v43 = vld [vmem:[#allocation2 + $0x1a8] sm:$0xff] }
  0x59   :  { %206 = vmatprep.subr.mxu0 %v145_v14  ;;  %v180_v44 = vld [vmem:[#allocation2 + $0x1a0] sm:$0xff]  ;;  %v179_v45 = vld [vmem:[#allocation2 + $0x198] sm:$0xff]  ;;  %v178_v46 = vld [vmem:[#allocation2 + $0x190] sm:$0xff] }
  0x5a   :  { %207 = vmatpush1.msra.mxu0 %v144_v15  ;;  %v177_v47 = vld [vmem:[#allocation2 + $0x188] sm:$0xff]  ;;  %v176_v48 = vld [vmem:[#allocation2 + $0x180] sm:$0xff]  ;;  %v175_v49 = vld [vmem:[#allocation2 + $0x178] sm:$0xff] }
  0x5b   :  { %208 = vmatprep.subr.mxu0 %v143_v16  ;;  %v174_v50 = vld [vmem:[#allocation2 + $0x170] sm:$0xff]  ;;  %v173_v51 = vld [vmem:[#allocation2 + $0x168] sm:$0xff]  ;;  %v172_v52 = vld [vmem:[#allocation2 + $0x160] sm:$0xff] }
  0x5c   :  { %209 = vmatpush1.msra.mxu0 %v142_v17  ;;  %v171_v53 = vld [vmem:[#allocation2 + $0x158] sm:$0xff]  ;;  %v170_v54 = vld [vmem:[#allocation2 + $0x150] sm:$0xff]  ;;  %v169_v55 = vld [vmem:[#allocation2 + $0x148] sm:$0xff] }
  0x5d   :  { %210 = vmatprep.subr.mxu0 %v141_v18  ;;  %v168_v56 = vld [vmem:[#allocation2 + $0x140] sm:$0xff]  ;;  %v167_v57 = vld [vmem:[#allocation2 + $0x138] sm:$0xff]  ;;  %v166_v58 = vld [vmem:[#allocation2 + $0x130] sm:$0xff] }
  0x5e   :  { %211 = vmatpush1.msra.mxu0 %v140_v19  ;;  %v165_v59 = vld [vmem:[#allocation2 + $0x128] sm:$0xff]  ;;  %v164_v60 = vld [vmem:[#allocation2 + $0x120] sm:$0xff]  ;;  %v163_v61 = vld [vmem:[#allocation2 + $0x118] sm:$0xff] }
  0x5f   :  { %212 = vmatprep.subr.mxu0 %v139_v20  ;;  %v162_v62 = vld [vmem:[#allocation2 + $0x110] sm:$0xff]  ;;  %v161_v63 = vld [vmem:[#allocation2 + $0x108] sm:$0xff]  ;;  %v160_v0 = vld [vmem:[#allocation2 + $0x100] sm:$0xff] }
  0x60   :  { %213 = vmatpush1.msra.mxu0 %v138_v21  ;;  %v126_v1 = vld [vmem:[%s1785_s0] sm:$0xff]  ;;  %v405_v2 = vld [vmem:[#allocation4 + $0xf8] sm:$0xff]  ;;  %v404_v4 = vld [vmem:[#allocation4 + $0xf0] sm:$0xff] }
  0x61   :  { %214 = vmatprep.subr.mxu0 %v137_v22  ;;  %v389_v3 = vld [vmem:[#allocation4 + $0x78] sm:$0xff]  ;;  %1229 = vmatprep.subr.mxu1 %v405_v2  ;;  %v388_v5 = vld [vmem:[#allocation4 + $0x70] sm:$0xff]  ;;  %v403_v6 = vld [vmem:[#allocation4 + $0xe8] sm:$0xff] }
  0x62   :  { %215 = vmatpush1.msra.mxu0 %v136_v23  ;;  %1230 = vmatpush3.msra.mxu1 %v389_v3  ;;  %v387_v7 = vld [vmem:[#allocation4 + $0x68] sm:$0xff]  ;;  %v402_v8 = vld [vmem:[#allocation4 + $0xe0] sm:$0xff]  ;;  %v401_v10 = vld [vmem:[#allocation4 + $0xd8] sm:$0xff] }
  0x63   :  { %216 = vmatprep.subr.mxu0 %v135_v25  ;;  %1231 = vmatprep.subr.mxu1 %v404_v4  ;;  %v386_v9 = vld [vmem:[#allocation4 + $0x60] sm:$0xff]  ;;  %v385_v11 = vld [vmem:[#allocation4 + $0x58] sm:$0xff]  ;;  %v400_v12 = vld [vmem:[#allocation4 + $0xd0] sm:$0xff] }
  0x64   :  { %217 = vmatpush1.msra.mxu0 %v134_v26  ;;  %1232 = vmatpush3.msra.mxu1 %v388_v5  ;;  %v384_v13 = vld [vmem:[#allocation4 + $0x50] sm:$0xff]  ;;  %v399_v14 = vld [vmem:[#allocation4 + $0xc8] sm:$0xff]  ;;  %v398_v16 = vld [vmem:[#allocation4 + $0xc0] sm:$0xff] }
  0x65   :  { %218 = vmatprep.subr.mxu0 %v133_v27  ;;  %1233 = vmatprep.subr.mxu1 %v403_v6  ;;  %v383_v15 = vld [vmem:[#allocation4 + $0x48] sm:$0xff]  ;;  %v382_v17 = vld [vmem:[#allocation4 + $0x40] sm:$0xff]  ;;  %v397_v18 = vld [vmem:[#allocation4 + $0xb8] sm:$0xff] }
  0x66   :  { %219 = vmatpush1.msra.mxu0 %v132_v28  ;;  %1234 = vmatpush3.msra.mxu1 %v387_v7  ;;  %v381_v19 = vld [vmem:[#allocation4 + $0x38] sm:$0xff]  ;;  %v396_v20 = vld [vmem:[#allocation4 + $0xb0] sm:$0xff]  ;;  %v395_v22 = vld [vmem:[#allocation4 + $0xa8] sm:$0xff] }
  0x67   :  { %220 = vmatprep.subr.mxu0 %v131_v29  ;;  %1235 = vmatprep.subr.mxu1 %v402_v8  ;;  %v380_v21 = vld [vmem:[#allocation4 + $0x30] sm:$0xff]  ;;  %v379_v23 = vld [vmem:[#allocation4 + $0x28] sm:$0xff]  ;;  %v394_v24 = vld [vmem:[#allocation4 + $0xa0] sm:$0xff] }
  0x68   :  { %221 = vmatpush1.msra.mxu0 %v130_v30  ;;  %1236 = vmatpush3.msra.mxu1 %v386_v9  ;;  %v378_v25 = vld [vmem:[#allocation4 + $0x20] sm:$0xff]  ;;  %v393_v26 = vld [vmem:[#allocation4 + $0x98] sm:$0xff]  ;;  %v392_v28 = vld [vmem:[#allocation4 + $0x90] sm:$0xff] }
  0x69   :  { %222 = vmatprep.subr.mxu0 %v129_v31  ;;  %1237 = vmatprep.subr.mxu1 %v401_v10  ;;  %v377_v27 = vld [vmem:[#allocation4 + $0x18] sm:$0xff]  ;;  %v376_v29 = vld [vmem:[#allocation4 + $0x10] sm:$0xff]  ;;  %v391_v30 = vld [vmem:[#allocation4 + $0x88] sm:$0xff]  ;;  %v1541_v10 = vmov 1966171168  }
  0x6a   :  { %223 = vmatpush1.msra.mxu0 %v128_v32  ;;  %1238 = vmatpush3.msra.mxu1 %v385_v11  ;;  %v375_v31 = vld [vmem:[#allocation4 + $0x8] sm:$0xff]  ;;  %v390_v32 = vld [vmem:[#allocation4 + $0x80] sm:$0xff]  ;;  %v308_v11 = vunpack.c.l.s4 %v1541_v10 }
  0x6b   :  { %224 = vmatprep.subr.mxu0 %v191_v33  ;;  %1239 = vmatprep.subr.mxu1 %v400_v12  ;;  %v374_v33 = vld [vmem:[#allocation4] sm:$0xff]  ;;  %v310_v12 = vlaneseq }
  0x6c   :  { %225 = vmatpush2.msra.mxu0 %v190_v34  ;;  %1240 = vmatpush3.msra.mxu1 %v384_v13  ;;  %v309_v13 = vunpack.c.0.s8 %v308_v11 }
  0x6d   :  { %226 = vmatprep.subr.mxu0 %v189_v35  ;;  %1241 = vmatprep.subr.mxu1 %v399_v14  ;;  %v311_v14 = vshrl.u32 %v310_v12, 7 }
  0x6e   :  { %227 = vmatpush2.msra.mxu0 %v188_v36  ;;  %1242 = vmatpush3.msra.mxu1 %v383_v15 }
  0x6f   :  { %228 = vmatprep.subr.mxu0 %v187_v37  ;;  %1243 = vmatprep.subr.mxu1 %v398_v16  ;;  %v1668_v16 = vsub.s32 %v309_v13, %v311_v14 }
  0x70   :  { %229 = vmatpush2.msra.mxu0 %v186_v38  ;;  %1244 = vmatpush3.msra.mxu1 %v382_v17 }
  0x71   :  { %230 = vmatprep.subr.mxu0 %v185_v39  ;;  %1245 = vmatprep.subr.mxu1 %v397_v18 }
  0x72   :  { %231 = vmatpush2.msra.mxu0 %v184_v40  ;;  %1246 = vmatpush3.msra.mxu1 %v381_v19 }
  0x73   :  { %232 = vmatprep.subr.mxu0 %v183_v41  ;;  %1247 = vmatprep.subr.mxu1 %v396_v20  ;;  %v299_v20 = vld [vmem:[%s1792_s7] ss:$8 sm:$0x3] }
  0x74   :  { %233 = vmatpush2.msra.mxu0 %v182_v42  ;;  %1248 = vmatpush3.msra.mxu1 %v380_v21 }
  0x75   :  { %234 = vmatprep.subr.mxu0 %v181_v43  ;;  %1249 = vmatprep.subr.mxu1 %v395_v22  ;;  %v1675_v22 = vsub.s32 0, %v311_v14 }
  0x76   :  { %235 = vmatpush2.msra.mxu0 %v180_v44  ;;  %1250 = vmatpush3.msra.mxu1 %v379_v23  ;;  %v1677_v23 = vsub.s32 1, %v311_v14 }
  0x77   :  { %236 = vmatprep.subr.mxu0 %v179_v45  ;;  %1251 = vmatprep.subr.mxu1 %v394_v24 }
  0x78   :  { %237 = vmatpush2.msra.mxu0 %v178_v46  ;;  %1252 = vmatpush3.msra.mxu1 %v378_v25 }
  0x79   :  { %238 = vmatprep.subr.mxu0 %v177_v47  ;;  %1253 = vmatprep.subr.mxu1 %v393_v26 }
  0x7a   :  { %239 = vmatpush2.msra.mxu0 %v176_v48  ;;  %1254 = vmatpush3.msra.mxu1 %v377_v27 }
  0x7b   :  { %240 = vmatprep.subr.mxu0 %v175_v49  ;;  %1255 = vmatprep.subr.mxu1 %v392_v28 }
  0x7c   :  { %241 = vmatpush2.msra.mxu0 %v174_v50  ;;  %1256 = vmatpush3.msra.mxu1 %v376_v29 }
  0x7d   :  { %242 = vmatprep.subr.mxu0 %v173_v51  ;;  %1257 = vmatprep.subr.mxu1 %v391_v30 }
  0x7e   :  { %243 = vmatpush2.msra.mxu0 %v172_v52  ;;  %1258 = vmatpush3.msra.mxu1 %v375_v31  ;;  %v1226_v31 = vld [vmem:[%s1792_s7 + $0x1] ss:$8 sm:$0x3] }
  0x7f   :  { %244 = vmatprep.subr.mxu0 %v171_v53  ;;  %1259 = vmatprep.subr.mxu1 %v390_v32 }
  0x80   :  { %245 = vmatpush2.msra.mxu0 %v170_v54  ;;  %1260 = vmatpush3.msra.mxu1 %v374_v33 }
  0x81   :  { %246 = vmatprep.subr.mxu0 %v169_v55 }
  0x82   :  { %247 = vmatpush2.msra.mxu0 %v168_v56 }
  0x83   :  { %248 = vmatprep.subr.mxu0 %v167_v57 }
  0x84   :  { %249 = vmatpush2.msra.mxu0 %v166_v58 }
  0x85   :  { %250 = vmatprep.subr.mxu0 %v165_v59 }
  0x86   :  { %251 = vmatpush2.msra.mxu0 %v164_v60 }
  0x87   :  { %252 = vmatprep.subr.mxu0 %v163_v61 }
  0x88   :  { %253 = vmatpush2.msra.mxu0 %v162_v62 }
  0x89   :  { %254 = vmatprep.subr.mxu0 %v161_v63 }
  0x8a   :  { %255 = vmatpush2.msra.mxu0 %v160_v0 }
  0x8b   :  { %257 = vmatmul.mubr.f32.vlgmr.msra.gmra.mxu0 %v126_v1 }
 0x14b   :  { %v1656_v34 = vpop.f32.mrf.mxu0 }
 0x14c   :  { %v263_v35 = vrot.slane %v1656_v34, 4  ;;  %v277_v36 = vmul.f32 %v1656_v34, %v1656_v34 }
 0x14d   :  { %v1661_v37 = vpop.f32.mrf.mxu0 }
 0x14e   :  { %v264_v38 = vadd.f32 %v263_v35, %v1656_v34  ;;  %v279_v39 = vrot.slane %v277_v36, 4  ;;  %v269_v40 = vrot.slane %v1661_v37, 4  ;;  %v278_v41 = vmul.f32 %v1661_v37, %v1661_v37 }
 0x150   :  { %v265_v42 = vrot.slane %v264_v38, 2  ;;  %v280_v43 = vadd.f32 %v279_v39, %v277_v36  ;;  %v270_v44 = vadd.f32 %v269_v40, %v1661_v37  ;;  %v285_v45 = vrot.slane %v278_v41, 4 }
 0x152   :  { %v266_v46 = vadd.f32 %v265_v42, %v264_v38  ;;  %v281_v47 = vrot.slane %v280_v43, 2  ;;  %v271_v48 = vrot.slane %v270_v44, 2  ;;  %v286_v49 = vadd.f32 %v285_v45, %v278_v41  ;;  %v527_v45 = vld [vmem:[#allocation6 + $0x78] sm:$0xff] }
 0x154   :  { %v267_v50 = vrot.slane %v266_v46, 1  ;;  %v282_v51 = vadd.f32 %v281_v47, %v280_v43  ;;  %v272_v52 = vadd.f32 %v271_v48, %v270_v44  ;;  %v287_v53 = vrot.slane %v286_v49, 2  ;;  %v523_v47 = vld [vmem:[#allocation6 + $0x58] sm:$0xff]  ;;  %v522_v48 = vld [vmem:[#allocation6 + $0x50] sm:$0xff] }
 0x155   :  { %v1542_v44 = vmov 0.0  }
 0x156   :  { %v268_v54 = vadd.f32 %v267_v50, %v266_v46  ;;  %v283_v55 = vrot.slane %v282_v51, 1  ;;  %v273_v56 = vrot.slane %v272_v52, 1  ;;  %v288_v57 = vadd.f32 %v287_v53, %v286_v49  ;;  %1298 = vmatprep.subr.mxu1 %v1542_v44  ;;  %v524_v46 = vld [vmem:[#allocation6 + $0x60] sm:$0xff]  ;;  %v521_v49 = vld [vmem:[#allocation6 + $0x48] sm:$0xff] }
 0x157   :  { %v520_v50 = vld [vmem:[#allocation6 + $0x40] sm:$0xff]  ;;  %v517_v53 = vld [vmem:[#allocation6 + $0x28] sm:$0xff] }
 0x158   :  { %v275_v58 = vmul.f32 0.125, %v268_v54  ;;  %v284_v59 = vadd.f32 %v283_v55, %v282_v51  ;;  %v289_v60 = vrot.slane %v288_v57, 1  ;;  %v274_v61 = vadd.f32 %v273_v56, %v272_v52  ;;  %v519_v51 = vld [vmem:[#allocation6 + $0x38] sm:$0xff]  ;;  %v518_v52 = vld [vmem:[#allocation6 + $0x30] sm:$0xff]  ;;  %v516_v54 = vld [vmem:[#allocation6 + $0x20] sm:$0xff] }
 0x159   :  { %v515_v55 = vld [vmem:[#allocation6 + $0x18] sm:$0xff]  ;;  %v514_v56 = vld [vmem:[#allocation6 + $0x10] sm:$0xff] }
 0x15a   :  { %v291_v62 = vmul.f32 0.125, %v284_v59  ;;  %v293_v63 = vmul.f32 %v275_v58, %v275_v58  ;;  %v290_v0 = vadd.f32 %v289_v60, %v288_v57  ;;  %v276_v1 = vmul.f32 0.125, %v274_v61  ;;  %v513_v57 = vld [vmem:[#allocation6 + $0x8] sm:$0xff] }
 0x15c   :  { %v295_v2 = vsub.f32 %v291_v62, %v293_v63  ;;  %v292_v3 = vmul.f32 0.125, %v290_v0  ;;  %v294_v4 = vmul.f32 %v276_v1, %v276_v1 }
 0x15e   :  { %v297_v5 = vmax.f32 %v295_v2, 0.0  ;;  %v296_v6 = vsub.f32 %v292_v3, %v294_v4 }
 0x160   :  { %v300_v7 = vadd.f32 1e-05, %v297_v5  ;;  %v298_v8 = vmax.f32 %v296_v6, 0.0 }
 0x162   :  { %v301_v9 = vadd.f32 1e-05, %v298_v8  ;;  %1381 = vrsqrt.f32 %v300_v7 }
 0x164   :  { %1383 = vrsqrt.f32 %v301_v9 }
 0x16f   :  { %v1382_v15 = vpop.eup %1381 }
 0x171   :  { %v1384_v17 = vpop.eup %1383 }
 0x172   :  { %v306_v18 = vcombine.low %v1382_v15, %v1384_v17 }
 0x174   :  { %v313_v19 = vrot.slane %v306_v18, %v1668_v16  ;;  %v494_v18 = vld [vmem:[%s1793_s8] sm:$0x1] }
 0x176   :  { %v320_v21 = vrot.slane %v313_v19, %v1668_v16 }
 0x178   :  { %v322_v24 = vmul.f32 %v320_v21, %v299_v20  ;;  %v498_v21 = vld [vmem:[%s1793_s8 + $0x1] sm:$0x1] }
 0x17a   :  { %v329_v25 = vrot.slane %v322_v24, %v1675_v22  ;;  %v333_v26 = vrot.slane %v322_v24, %v1677_v23 }
 0x17c   :  { %v336_v27 = vmul.f32 %v329_v25, %v275_v58  ;;  %v337_v28 = vmul.f32 %v333_v26, %v276_v1  ;;  %v358_v35 = vmul.f32 %v333_v26, %v1661_v37  ;;  %v357_v38 = vmul.f32 %v329_v25, %v1656_v34  ;;  %v526_v37 = vld [vmem:[#allocation6 + $0x70] sm:$0xff]  ;;  %v525_v34 = vld [vmem:[#allocation6 + $0x68] sm:$0xff]  ;;  %v512_v58 = vld [vmem:[#allocation6] sm:$0xff] }
 0x17e   :  { %v340_v29 = vcombine.low %v336_v27, %v337_v28 }
 0x180   :  { %v347_v30 = vrot.slane %v340_v29, %v1668_v16 }
 0x182   :  { %v354_v32 = vrot.slane %v347_v30, %v1668_v16 }
 0x184   :  { %v356_v33 = vsub.f32 %v1226_v31, %v354_v32  ;;  %v649_v31 = vld [vmem:[#allocation7 + $0x78] sm:$0xff]  ;;  %v648_v32 = vld [vmem:[#allocation7 + $0x70] sm:$0xff] }
 0x186   :  { %v367_v36 = vrot.slane %v356_v33, %v1677_v23  ;;  %v363_v39 = vrot.slane %v356_v33, %v1675_v22  ;;  %v647_v33 = vld [vmem:[#allocation7 + $0x68] sm:$0xff] }
 0x188   :  { %v371_v40 = vadd.f32 %v367_v36, %v358_v35  ;;  %v370_v41 = vadd.f32 %v363_v39, %v357_v38  ;;  %v646_v35 = vld [vmem:[#allocation7 + $0x60] sm:$0xff]  ;;  %v645_v36 = vld [vmem:[#allocation7 + $0x58] sm:$0xff]  ;;  %v644_v38 = vld [vmem:[#allocation7 + $0x50] sm:$0xff] }
 0x189   :  { %v643_v39 = vld [vmem:[#allocation7 + $0x48] sm:$0xff] }
 0x18a   :  { %v373_v42 = vmax.f32 %v371_v40, 0.0  ;;  %v372_v43 = vmax.f32 %v370_v41, 0.0  ;;  %v642_v40 = vld [vmem:[#allocation7 + $0x40] sm:$0xff]  ;;  %v641_v41 = vld [vmem:[#allocation7 + $0x38] sm:$0xff] }
 0x18c   :  { %470 = vmatprep.mubr.f32.mxu1 %v373_v42  ;;  %v640_v42 = vld [vmem:[#allocation7 + $0x30] sm:$0xff] }
 0x18d   :  { %471 = vmatmul.mubr.f32.vlgmr.msra.gmra.mxu1 %v372_v43  ;;  %v639_v43 = vld [vmem:[#allocation7 + $0x28] sm:$0xff] }
 0x18e   :  { %1299 = vmatpush3.msra.mxu1 %v527_v45  ;;  %1330 = vmatprep.mubr.msk.f32.mxu1 %vm1543_vm0, %v1542_v44  ;;  %v638_v45 = vld [vmem:[#allocation7 + $0x20] sm:$0xff] }
 0x18f   :  { %1300 = vmatprep.subr.mxu1 %v1542_v44 }
 0x190   :  { %1301 = vmatpush3.msra.mxu1 %v526_v37  ;;  %v637_v37 = vld [vmem:[#allocation7 + $0x18] sm:$0xff] }
 0x191   :  { %1302 = vmatprep.subr.mxu1 %v1542_v44 }
 0x192   :  { %1303 = vmatpush3.msra.mxu1 %v525_v34  ;;  %v636_v34 = vld [vmem:[#allocation7 + $0x10] sm:$0xff] }
 0x193   :  { %1304 = vmatprep.subr.mxu1 %v1542_v44 }
 0x194   :  { %1305 = vmatpush3.msra.mxu1 %v524_v46  ;;  %v635_v46 = vld [vmem:[#allocation7 + $0x8] sm:$0xff] }
 0x195   :  { %1306 = vmatprep.subr.mxu1 %v1542_v44 }
 0x196   :  { %1307 = vmatpush3.msra.mxu1 %v523_v47  ;;  %v634_v47 = vld [vmem:[#allocation7] sm:$0xff] }
 0x197   :  { %1308 = vmatprep.subr.mxu1 %v1542_v44 }
 0x198   :  { %1309 = vmatpush3.msra.mxu1 %v522_v48 }
 0x199   :  { %1310 = vmatprep.subr.mxu1 %v1542_v44 }
 0x19a   :  { %1311 = vmatpush3.msra.mxu1 %v521_v49 }
 0x19b   :  { %1312 = vmatprep.subr.mxu1 %v1542_v44 }
 0x19c   :  { %1313 = vmatpush3.msra.mxu1 %v520_v50 }
 0x19d   :  { %1314 = vmatprep.subr.mxu1 %v1542_v44 }
 0x19e   :  { %1315 = vmatpush3.msra.mxu1 %v519_v51 }
 0x19f   :  { %1316 = vmatprep.subr.mxu1 %v1542_v44 }
 0x1a0   :  { %1317 = vmatpush3.msra.mxu1 %v518_v52 }
 0x1a1   :  { %1318 = vmatprep.subr.mxu1 %v1542_v44 }
 0x1a2   :  { %1319 = vmatpush3.msra.mxu1 %v517_v53 }
 0x1a3   :  { %1320 = vmatprep.subr.mxu1 %v1542_v44 }
 0x1a4   :  { %1321 = vmatpush3.msra.mxu1 %v516_v54 }
 0x1a5   :  { %1322 = vmatprep.subr.mxu1 %v1542_v44 }
 0x1a6   :  { %1323 = vmatpush3.msra.mxu1 %v515_v55 }
 0x1a7   :  { %1324 = vmatprep.subr.mxu1 %v1542_v44 }
 0x1a8   :  { %1325 = vmatpush3.msra.mxu1 %v514_v56 }
 0x1a9   :  { %1326 = vmatprep.subr.mxu1 %v1542_v44 }
 0x1aa   :  { %1327 = vmatpush3.msra.mxu1 %v513_v57 }
 0x1ab   :  { %1328 = vmatprep.subr.mxu1 %v1542_v44 }
 0x1ac   :  { %1329 = vmatpush3.msra.mxu1 %v512_v58 }
 0x1ad   :  { %1333 = vmatprep.subr.mxu1 %v1542_v44 }
 0x24d   :  { %v1261_v59 = vpop.f32.mrf.mxu1 }
 0x24f   :  { %v1262_v60 = vpop.f32.mrf.mxu1 }
 0x250   :  { %v1263_v61 = vadd.f32 %v1262_v60, %v1261_v59 }
 0x252   :  { %v476_v62 = vrot.slane %v1263_v61, 4  ;;  %v483_v63 = vmul.f32 %v1263_v61, %v1263_v61 }
 0x254   :  { %v477_v0 = vadd.f32 %v1263_v61, %v476_v62  ;;  %v484_v1 = vrot.slane %v483_v63, 4 }
 0x256   :  { %v478_v2 = vrot.slane %v477_v0, 2  ;;  %v485_v3 = vadd.f32 %v484_v1, %v483_v63 }
 0x258   :  { %v479_v4 = vadd.f32 %v478_v2, %v477_v0  ;;  %v486_v5 = vrot.slane %v485_v3, 2 }
 0x25a   :  { %v480_v6 = vrot.slane %v479_v4, 1  ;;  %v487_v7 = vadd.f32 %v486_v5, %v485_v3  ;;  %v616_v5 = vld [vmem:[%s1794_s9] sm:$0x1] }
 0x25c   :  { %v481_v8 = vadd.f32 %v480_v6, %v479_v4  ;;  %v488_v9 = vrot.slane %v487_v7, 1 }
 0x25e   :  { %v482_v10 = vmul.f32 0.125, %v481_v8  ;;  %v489_v11 = vadd.f32 %v488_v9, %v487_v7  ;;  %v620_v8 = vld [vmem:[%s1794_s9 + $0x1] sm:$0x1] }
 0x260   :  { %v490_v12 = vmul.f32 0.125, %v489_v11  ;;  %v491_v13 = vmul.f32 %v482_v10, %v482_v10 }
 0x262   :  { %v492_v14 = vsub.f32 %v490_v12, %v491_v13 }
 0x264   :  { %v493_v15 = vmax.f32 %v492_v14, 0.0 }
 0x266   :  { %v495_v17 = vadd.f32 1e-05, %v493_v15 }
 0x268   :  { %1385 = vrsqrt.f32 %v495_v17  ;;  %v787_v17 = vld [vmem:[#allocation9 + $0xf8] sm:$0xff] }
 0x275   :  { %v1386_v19 = vpop.eup %1385 }
 0x276   :  { %v497_v20 = vmul.f32 %v1386_v19, %v494_v18  ;;  %v786_v18 = vld [vmem:[#allocation9 + $0xf0] sm:$0xff]  ;;  %v785_v19 = vld [vmem:[#allocation9 + $0xe8] sm:$0xff] }
 0x278   :  { %v504_v24 = vrot.slane %v497_v20, %v1675_v22  ;;  %v499_v25 = vmul.f32 %v497_v20, %v482_v10  ;;  %v784_v20 = vld [vmem:[#allocation9 + $0xe0] sm:$0xff] }
 0x27a   :  { %v500_v26 = vsub.f32 %v498_v21, %v499_v25  ;;  %v505_v27 = vmul.f32 %v1263_v61, %v504_v24  ;;  %v783_v21 = vld [vmem:[#allocation9 + $0xd8] sm:$0xff]  ;;  %v782_v24 = vld [vmem:[#allocation9 + $0xd0] sm:$0xff]  ;;  %v781_v25 = vld [vmem:[#allocation9 + $0xc8] sm:$0xff] }
 0x27c   :  { %v509_v28 = vrot.slane %v500_v26, %v1675_v22  ;;  %v780_v26 = vld [vmem:[#allocation9 + $0xc0] sm:$0xff] }
 0x27e   :  { %v510_v29 = vadd.f32 %v509_v28, %v505_v27  ;;  %v779_v27 = vld [vmem:[#allocation9 + $0xb8] sm:$0xff]  ;;  %v778_v28 = vld [vmem:[#allocation9 + $0xb0] sm:$0xff] }
 0x280   :  { %v511_v30 = vmax.f32 %v510_v29, 0.0  ;;  %v776_v29 = vld [vmem:[#allocation9 + $0xa0] sm:$0xff] }
 0x282   :  { %1331 = vmatmul.mubr.f32.vlgmr.msra.gmra.mxu1 %v511_v30  ;;  %v775_v30 = vld [vmem:[#allocation9 + $0x98] sm:$0xff] }
 0x283   :  { %1365 = vmatprep.mubr.msk.f32.mxu1 %vm1543_vm0, %v1542_v44  ;;  %1334 = vmatpush3.msra.mxu1 %v649_v31  ;;  %v774_v31 = vld [vmem:[#allocation9 + $0x90] sm:$0xff] }
 0x284   :  { %1335 = vmatprep.subr.mxu1 %v1542_v44 }
 0x285   :  { %1336 = vmatpush3.msra.mxu1 %v648_v32  ;;  %v773_v32 = vld [vmem:[#allocation9 + $0x88] sm:$0xff] }
 0x286   :  { %1337 = vmatprep.subr.mxu1 %v1542_v44 }
 0x287   :  { %1338 = vmatpush3.msra.mxu1 %v647_v33  ;;  %v772_v33 = vld [vmem:[#allocation9 + $0x80] sm:$0xff] }
 0x288   :  { %1339 = vmatprep.subr.mxu1 %v1542_v44 }
 0x289   :  { %1340 = vmatpush3.msra.mxu1 %v646_v35  ;;  %v771_v35 = vld [vmem:[#allocation9 + $0x78] sm:$0xff] }
 0x28a   :  { %1341 = vmatprep.subr.mxu1 %v1542_v44 }
 0x28b   :  { %1342 = vmatpush3.msra.mxu1 %v645_v36  ;;  %v770_v36 = vld [vmem:[#allocation9 + $0x70] sm:$0xff] }
 0x28c   :  { %1343 = vmatprep.subr.mxu1 %v1542_v44 }
 0x28d   :  { %1344 = vmatpush3.msra.mxu1 %v644_v38  ;;  %v769_v38 = vld [vmem:[#allocation9 + $0x68] sm:$0xff] }
 0x28e   :  { %1345 = vmatprep.subr.mxu1 %v1542_v44 }
 0x28f   :  { %1346 = vmatpush3.msra.mxu1 %v643_v39  ;;  %v768_v39 = vld [vmem:[#allocation9 + $0x60] sm:$0xff] }
 0x290   :  { %1347 = vmatprep.subr.mxu1 %v1542_v44 }
 0x291   :  { %1348 = vmatpush3.msra.mxu1 %v642_v40  ;;  %v767_v40 = vld [vmem:[#allocation9 + $0x58] sm:$0xff] }
 0x292   :  { %1349 = vmatprep.subr.mxu1 %v1542_v44 }
 0x293   :  { %1350 = vmatpush3.msra.mxu1 %v641_v41  ;;  %v766_v41 = vld [vmem:[#allocation9 + $0x50] sm:$0xff] }
 0x294   :  { %1351 = vmatprep.subr.mxu1 %v1542_v44 }
 0x295   :  { %1352 = vmatpush3.msra.mxu1 %v640_v42  ;;  %v765_v42 = vld [vmem:[#allocation9 + $0x48] sm:$0xff] }
 0x296   :  { %1353 = vmatprep.subr.mxu1 %v1542_v44 }
 0x297   :  { %1354 = vmatpush3.msra.mxu1 %v639_v43  ;;  %v764_v43 = vld [vmem:[#allocation9 + $0x40] sm:$0xff] }
 0x298   :  { %1355 = vmatprep.subr.mxu1 %v1542_v44 }
 0x299   :  { %1356 = vmatpush3.msra.mxu1 %v638_v45  ;;  %v763_v45 = vld [vmem:[#allocation9 + $0x38] sm:$0xff] }
 0x29a   :  { %1357 = vmatprep.subr.mxu1 %v1542_v44 }
 0x29b   :  { %1358 = vmatpush3.msra.mxu1 %v637_v37  ;;  %v762_v37 = vld [vmem:[#allocation9 + $0x30] sm:$0xff] }
 0x29c   :  { %1359 = vmatprep.subr.mxu1 %v1542_v44 }
 0x29d   :  { %1360 = vmatpush3.msra.mxu1 %v636_v34  ;;  %v761_v34 = vld [vmem:[#allocation9 + $0x28] sm:$0xff] }
 0x29e   :  { %1361 = vmatprep.subr.mxu1 %v1542_v44 }
 0x29f   :  { %1362 = vmatpush3.msra.mxu1 %v635_v46  ;;  %v760_v46 = vld [vmem:[#allocation9 + $0x20] sm:$0xff] }
 0x2a0   :  { %1363 = vmatprep.subr.mxu1 %v1542_v44 }
 0x2a1   :  { %1364 = vmatpush3.msra.mxu1 %v634_v47  ;;  %v759_v47 = vld [vmem:[#allocation9 + $0x18] sm:$0xff] }
 0x2a2   :  { %788 = vmatprep.subr.mxu1 %v787_v17 }
 0x342   :  { %v594_v48 = vpop.f32.mrf.mxu1 }
 0x343   :  { %v598_v49 = vrot.slane %v594_v48, 4  ;;  %v605_v50 = vmul.f32 %v594_v48, %v594_v48 }
 0x344   :  { %v1332_v51 = vpop.f32.mrf.mxu1 }
 0x345   :  { %v599_v52 = vadd.f32 %v598_v49, %v594_v48  ;;  %v606_v53 = vrot.slane %v605_v50, 4  ;;  %v757_v49 = vld [vmem:[#allocation9 + $0x8] sm:$0xff] }
 0x347   :  { %v600_v54 = vrot.slane %v599_v52, 2  ;;  %v607_v55 = vadd.f32 %v606_v53, %v605_v50  ;;  %v756_v50 = vld [vmem:[#allocation9] sm:$0xff] }
 0x349   :  { %v601_v56 = vadd.f32 %v600_v54, %v599_v52  ;;  %v608_v57 = vrot.slane %v607_v55, 2 }
 0x34b   :  { %v602_v58 = vrot.slane %v601_v56, 1  ;;  %v609_v59 = vadd.f32 %v608_v57, %v607_v55 }
 0x34d   :  { %v603_v60 = vadd.f32 %v602_v58, %v601_v56  ;;  %v610_v61 = vrot.slane %v609_v59, 1 }
 0x34f   :  { %v604_v62 = vmul.f32 0.125, %v603_v60  ;;  %v611_v63 = vadd.f32 %v610_v61, %v609_v59 }
 0x351   :  { %v612_v0 = vmul.f32 0.125, %v611_v63  ;;  %v613_v1 = vmul.f32 %v604_v62, %v604_v62 }
 0x353   :  { %v614_v2 = vsub.f32 %v612_v0, %v613_v1 }
 0x355   :  { %v615_v3 = vmax.f32 %v614_v2, 0.0 }
 0x357   :  { %v617_v4 = vadd.f32 1e-05, %v615_v3 }
 0x359   :  { %1387 = vrsqrt.f32 %v617_v4 }
 0x366   :  { %v1388_v6 = vpop.eup %1387 }
 0x367   :  { %v619_v7 = vmul.f32 %v1388_v6, %v616_v5 }
 0x369   :  { %v621_v9 = vmul.f32 %v619_v7, %v604_v62  ;;  %v626_v10 = vrot.slane %v619_v7, %v1675_v22 }
 0x36b   :  { %v622_v11 = vsub.f32 %v620_v8, %v621_v9  ;;  %v627_v12 = vmul.f32 %v626_v10, %v594_v48  ;;  %v758_v48 = vld [vmem:[#allocation9 + $0x10] sm:$0xff]  ;;  %v738_v8 = vld [vmem:[%s1795_s10] sm:$0x1] }
 0x36d   :  { %v631_v13 = vrot.slane %v622_v11, %v1675_v22  ;;  %v742_v11 = vld [vmem:[%s1795_s10 + $0x1] sm:$0x1] }
 0x36f   :  { %v632_v14 = vadd.f32 %v631_v13, %v627_v12 }
 0x371   :  { %v633_v15 = vmax.f32 %v632_v14, 0.0 }
 0x373   :  { %1366 = vmatmul.mubr.f32.vlgmr.msra.gmra.mxu1 %v633_v15 }
 0x374   :  { %852 = vmatprep.mubr.f32.mxu1 %v1542_v44  ;;  %789 = vmatpush1.msra.mxu1 %v786_v18  ;;  %v777_v44 = vld [vmem:[#allocation9 + $0xa8] sm:$0xff] }
 0x375   :  { %790 = vmatprep.subr.mxu1 %v785_v19 }
 0x376   :  { %791 = vmatpush1.msra.mxu1 %v784_v20  ;;  %v1001_v20 = vld [vmem:[#allocation10 + $0xf8] sm:$0xff] }
 0x377   :  { %792 = vmatprep.subr.mxu1 %v783_v21  ;;  %1034 = vmatprep.subr.mxu0 %v1001_v20  ;;  %v1000_v21 = vld [vmem:[#allocation10 + $0xf0] sm:$0xff] }
 0x378   :  { %793 = vmatpush1.msra.mxu1 %v782_v24  ;;  %1035 = vmatpush1.msra.mxu0 %v1000_v21  ;;  %v999_v24 = vld [vmem:[#allocation10 + $0xe8] sm:$0xff]  ;;  %v1004_v20 = vld [vmem:[#allocation10 + $0x110] sm:$0xff] }
 0x379   :  { %794 = vmatprep.subr.mxu1 %v781_v25  ;;  %1036 = vmatprep.subr.mxu0 %v999_v24  ;;  %v998_v25 = vld [vmem:[#allocation10 + $0xe0] sm:$0xff]  ;;  %v1003_v21 = vld [vmem:[#allocation10 + $0x108] sm:$0xff] }
 0x37a   :  { %795 = vmatpush1.msra.mxu1 %v780_v26  ;;  %1037 = vmatpush1.msra.mxu0 %v998_v25  ;;  %v997_v26 = vld [vmem:[#allocation10 + $0xd8] sm:$0xff]  ;;  %v1002_v24 = vld [vmem:[#allocation10 + $0x100] sm:$0xff] }
 0x37b   :  { %796 = vmatprep.subr.mxu1 %v779_v27  ;;  %1038 = vmatprep.subr.mxu0 %v997_v26  ;;  %v996_v27 = vld [vmem:[#allocation10 + $0xd0] sm:$0xff] }
 0x37c   :  { %797 = vmatpush1.msra.mxu1 %v778_v28  ;;  %1039 = vmatpush1.msra.mxu0 %v996_v27  ;;  %v995_v28 = vld [vmem:[#allocation10 + $0xc8] sm:$0xff] }
 0x37d   :  { %798 = vmatprep.subr.mxu1 %v777_v44  ;;  %1040 = vmatprep.subr.mxu0 %v995_v28  ;;  %v994_v44 = vld [vmem:[#allocation10 + $0xc0] sm:$0xff] }
 0x37e   :  { %799 = vmatpush1.msra.mxu1 %v776_v29  ;;  %1041 = vmatpush1.msra.mxu0 %v994_v44  ;;  %v993_v29 = vld [vmem:[#allocation10 + $0xb8] sm:$0xff] }
 0x37f   :  { %800 = vmatprep.subr.mxu1 %v775_v30  ;;  %1042 = vmatprep.subr.mxu0 %v993_v29  ;;  %v992_v30 = vld [vmem:[#allocation10 + $0xb0] sm:$0xff] }
 0x380   :  { %801 = vmatpush1.msra.mxu1 %v774_v31  ;;  %1043 = vmatpush1.msra.mxu0 %v992_v30  ;;  %v991_v31 = vld [vmem:[#allocation10 + $0xa8] sm:$0xff] }
 0x381   :  { %802 = vmatprep.subr.mxu1 %v773_v32  ;;  %1044 = vmatprep.subr.mxu0 %v991_v31  ;;  %v990_v32 = vld [vmem:[#allocation10 + $0xa0] sm:$0xff] }
 0x382   :  { %803 = vmatpush1.msra.mxu1 %v772_v33  ;;  %1045 = vmatpush1.msra.mxu0 %v990_v32  ;;  %v989_v33 = vld [vmem:[#allocation10 + $0x98] sm:$0xff] }
 0x383   :  { %804 = vmatprep.subr.mxu1 %v771_v35  ;;  %1046 = vmatprep.subr.mxu0 %v989_v33  ;;  %v988_v35 = vld [vmem:[#allocation10 + $0x90] sm:$0xff] }
 0x384   :  { %805 = vmatpush1.msra.mxu1 %v770_v36  ;;  %1047 = vmatpush1.msra.mxu0 %v988_v35  ;;  %v987_v36 = vld [vmem:[#allocation10 + $0x88] sm:$0xff] }
 0x385   :  { %806 = vmatprep.subr.mxu1 %v769_v38  ;;  %1048 = vmatprep.subr.mxu0 %v987_v36  ;;  %v986_v38 = vld [vmem:[#allocation10 + $0x80] sm:$0xff] }
 0x386   :  { %807 = vmatpush1.msra.mxu1 %v768_v39  ;;  %1049 = vmatpush1.msra.mxu0 %v986_v38  ;;  %v985_v39 = vld [vmem:[#allocation10 + $0x78] sm:$0xff] }
 0x387   :  { %808 = vmatprep.subr.mxu1 %v767_v40  ;;  %1050 = vmatprep.subr.mxu0 %v985_v39  ;;  %v984_v40 = vld [vmem:[#allocation10 + $0x70] sm:$0xff] }
 0x388   :  { %809 = vmatpush1.msra.mxu1 %v766_v41  ;;  %1051 = vmatpush1.msra.mxu0 %v984_v40  ;;  %v983_v41 = vld [vmem:[#allocation10 + $0x68] sm:$0xff] }
 0x389   :  { %810 = vmatprep.subr.mxu1 %v765_v42  ;;  %1052 = vmatprep.subr.mxu0 %v983_v41  ;;  %v982_v42 = vld [vmem:[#allocation10 + $0x60] sm:$0xff] }
 0x38a   :  { %811 = vmatpush1.msra.mxu1 %v764_v43  ;;  %1053 = vmatpush1.msra.mxu0 %v982_v42  ;;  %v981_v43 = vld [vmem:[#allocation10 + $0x58] sm:$0xff] }
 0x38b   :  { %812 = vmatprep.subr.mxu1 %v763_v45  ;;  %1054 = vmatprep.subr.mxu0 %v981_v43  ;;  %v980_v45 = vld [vmem:[#allocation10 + $0x50] sm:$0xff] }
 0x38c   :  { %813 = vmatpush1.msra.mxu1 %v762_v37  ;;  %1055 = vmatpush1.msra.mxu0 %v980_v45  ;;  %v979_v37 = vld [vmem:[#allocation10 + $0x48] sm:$0xff] }
 0x38d   :  { %814 = vmatprep.subr.mxu1 %v761_v34  ;;  %1056 = vmatprep.subr.mxu0 %v979_v37  ;;  %v978_v34 = vld [vmem:[#allocation10 + $0x40] sm:$0xff] }
 0x38e   :  { %815 = vmatpush1.msra.mxu1 %v760_v46  ;;  %1057 = vmatpush1.msra.mxu0 %v978_v34  ;;  %v977_v46 = vld [vmem:[#allocation10 + $0x38] sm:$0xff] }
 0x38f   :  { %816 = vmatprep.subr.mxu1 %v759_v47  ;;  %1058 = vmatprep.subr.mxu0 %v977_v46  ;;  %v976_v47 = vld [vmem:[#allocation10 + $0x30] sm:$0xff] }
 0x390   :  { %817 = vmatpush1.msra.mxu1 %v758_v48  ;;  %1059 = vmatpush1.msra.mxu0 %v976_v47  ;;  %v975_v48 = vld [vmem:[#allocation10 + $0x28] sm:$0xff] }
 0x391   :  { %818 = vmatprep.subr.mxu1 %v757_v49  ;;  %1060 = vmatprep.subr.mxu0 %v975_v48  ;;  %v974_v49 = vld [vmem:[#allocation10 + $0x20] sm:$0xff] }
 0x392   :  { %819 = vmatpush1.msra.mxu1 %v756_v50  ;;  %1061 = vmatpush1.msra.mxu0 %v974_v49  ;;  %v973_v50 = vld [vmem:[#allocation10 + $0x18] sm:$0xff] }
 0x393   :  { %1062 = vmatprep.subr.mxu0 %v973_v50 }
 0x433   :  { %v716_v51 = vpop.f32.mrf.mxu1 }
 0x434   :  { %v720_v52 = vrot.slane %v716_v51, 4  ;;  %v727_v53 = vmul.f32 %v716_v51, %v716_v51 }
 0x435   :  { %v1367_v54 = vpop.f32.mrf.mxu1 }
 0x436   :  { %v721_v55 = vadd.f32 %v720_v52, %v716_v51  ;;  %v728_v56 = vrot.slane %v727_v53, 4  ;;  %v971_v52 = vld [vmem:[#allocation10 + $0x8] sm:$0xff]  ;;  %v1033_v54 = vld [vmem:[#allocation10 + $0x1f8] sm:$0xff] }
 0x438   :  { %v722_v57 = vrot.slane %v721_v55, 2  ;;  %v729_v58 = vadd.f32 %v728_v56, %v727_v53  ;;  %v970_v53 = vld [vmem:[#allocation10] sm:$0xff]  ;;  %v1031_v56 = vld [vmem:[#allocation10 + $0x1e8] sm:$0xff] }
 0x43a   :  { %v723_v59 = vadd.f32 %v722_v57, %v721_v55  ;;  %v730_v60 = vrot.slane %v729_v58, 2  ;;  %v1032_v55 = vld [vmem:[#allocation10 + $0x1f0] sm:$0xff]  ;;  %v1030_v57 = vld [vmem:[#allocation10 + $0x1e0] sm:$0xff] }
 0x43c   :  { %v724_v61 = vrot.slane %v723_v59, 1  ;;  %v731_v62 = vadd.f32 %v730_v60, %v729_v58  ;;  %v1029_v58 = vld [vmem:[#allocation10 + $0x1d8] sm:$0xff]  ;;  %v1027_v60 = vld [vmem:[#allocation10 + $0x1c8] sm:$0xff] }
 0x43e   :  { %v725_v63 = vadd.f32 %v724_v61, %v723_v59  ;;  %v732_v0 = vrot.slane %v731_v62, 1  ;;  %v1028_v59 = vld [vmem:[#allocation10 + $0x1d0] sm:$0xff]  ;;  %v1026_v61 = vld [vmem:[#allocation10 + $0x1c0] sm:$0xff] }
 0x440   :  { %v726_v1 = vmul.f32 0.125, %v725_v63  ;;  %v733_v2 = vadd.f32 %v732_v0, %v731_v62  ;;  %v1025_v62 = vld [vmem:[#allocation10 + $0x1b8] sm:$0xff]  ;;  %v1024_v63 = vld [vmem:[#allocation10 + $0x1b0] sm:$0xff]  ;;  %v1023_v0 = vld [vmem:[#allocation10 + $0x1a8] sm:$0xff] }
 0x442   :  { %v734_v3 = vmul.f32 0.125, %v733_v2  ;;  %v735_v4 = vmul.f32 %v726_v1, %v726_v1  ;;  %v1021_v2 = vld [vmem:[#allocation10 + $0x198] sm:$0xff] }
 0x444   :  { %v736_v5 = vsub.f32 %v734_v3, %v735_v4  ;;  %v1020_v3 = vld [vmem:[#allocation10 + $0x190] sm:$0xff]  ;;  %v1019_v4 = vld [vmem:[#allocation10 + $0x188] sm:$0xff] }
 0x446   :  { %v737_v6 = vmax.f32 %v736_v5, 0.0  ;;  %v1018_v5 = vld [vmem:[#allocation10 + $0x180] sm:$0xff] }
 0x448   :  { %v739_v7 = vadd.f32 1e-05, %v737_v6  ;;  %v1017_v6 = vld [vmem:[#allocation10 + $0x178] sm:$0xff] }
 0x44a   :  { %1389 = vrsqrt.f32 %v739_v7  ;;  %v1016_v7 = vld [vmem:[#allocation10 + $0x170] sm:$0xff] }
 0x457   :  { %v1390_v9 = vpop.eup %1389 }
 0x458   :  { %v741_v10 = vmul.f32 %v1390_v9, %v738_v8  ;;  %v1015_v8 = vld [vmem:[#allocation10 + $0x168] sm:$0xff]  ;;  %v1014_v9 = vld [vmem:[#allocation10 + $0x160] sm:$0xff] }
 0x45a   :  { %v743_v12 = vmul.f32 %v741_v10, %v726_v1  ;;  %v748_v13 = vrot.slane %v741_v10, %v1675_v22  ;;  %v1022_v1 = vld [vmem:[#allocation10 + $0x1a0] sm:$0xff]  ;;  %v1013_v10 = vld [vmem:[#allocation10 + $0x158] sm:$0xff] }
 0x45c   :  { %v744_v14 = vsub.f32 %v742_v11, %v743_v12  ;;  %v749_v15 = vmul.f32 %v748_v13, %v716_v51  ;;  %v972_v51 = vld [vmem:[#allocation10 + $0x10] sm:$0xff]  ;;  %v1011_v12 = vld [vmem:[#allocation10 + $0x148] sm:$0xff]  ;;  %v1010_v13 = vld [vmem:[#allocation10 + $0x140] sm:$0xff] }
 0x45d   :  { %1063 = vmatpush1.msra.mxu0 %v972_v51  ;;  %v1012_v11 = vld [vmem:[#allocation10 + $0x150] sm:$0xff] }
 0x45e   :  { %v753_v17 = vrot.slane %v744_v14, %v1675_v22  ;;  %1064 = vmatprep.subr.mxu0 %v971_v52  ;;  %v1009_v14 = vld [vmem:[#allocation10 + $0x138] sm:$0xff] }
 0x45f   :  { %1065 = vmatpush1.msra.mxu0 %v970_v53 }
 0x460   :  { %v754_v18 = vadd.f32 %v753_v17, %v749_v15  ;;  %1066 = vmatprep.subr.mxu0 %v1033_v54  ;;  %v1008_v15 = vld [vmem:[#allocation10 + $0x130] sm:$0xff]  ;;  %v1007_v17 = vld [vmem:[#allocation10 + $0x128] sm:$0xff] }
 0x461   :  { %1067 = vmatpush2.msra.mxu0 %v1032_v55 }
 0x462   :  { %v755_v19 = vmax.f32 %v754_v18, 0.0  ;;  %1068 = vmatprep.subr.mxu0 %v1031_v56  ;;  %v1006_v18 = vld [vmem:[#allocation10 + $0x120] sm:$0xff] }
 0x463   :  { %1069 = vmatpush2.msra.mxu0 %v1030_v57 }
 0x464   :  { %853 = vmatmul.mubr.f32.vlgmr.msra.gmra.mxu1 %v755_v19  ;;  %1070 = vmatprep.subr.mxu0 %v1029_v58  ;;  %v1005_v19 = vld [vmem:[#allocation10 + $0x118] sm:$0xff] }
 0x465   :  { %1071 = vmatpush2.msra.mxu0 %v1028_v59 }
 0x466   :  { %1072 = vmatprep.subr.mxu0 %v1027_v60 }
 0x467   :  { %1073 = vmatpush2.msra.mxu0 %v1026_v61 }
 0x468   :  { %1074 = vmatprep.subr.mxu0 %v1025_v62 }
 0x469   :  { %1075 = vmatpush2.msra.mxu0 %v1024_v63 }
 0x46a   :  { %1076 = vmatprep.subr.mxu0 %v1023_v0 }
 0x46b   :  { %1077 = vmatpush2.msra.mxu0 %v1022_v1 }
 0x46c   :  { %1078 = vmatprep.subr.mxu0 %v1021_v2 }
 0x46d   :  { %1079 = vmatpush2.msra.mxu0 %v1020_v3 }
 0x46e   :  { %1080 = vmatprep.subr.mxu0 %v1019_v4 }
 0x46f   :  { %1081 = vmatpush2.msra.mxu0 %v1018_v5  ;;  %v895_v5 = vld [vmem:[%s1796_s11] ss:$8 sm:$0x3] }
 0x470   :  { %1082 = vmatprep.subr.mxu0 %v1017_v6 }
 0x471   :  { %1083 = vmatpush2.msra.mxu0 %v1016_v7 }
 0x472   :  { %1084 = vmatprep.subr.mxu0 %v1015_v8 }
 0x473   :  { %1085 = vmatpush2.msra.mxu0 %v1014_v9 }
 0x474   :  { %1086 = vmatprep.subr.mxu0 %v1013_v10 }
 0x475   :  { %1087 = vmatpush2.msra.mxu0 %v1012_v11 }
 0x476   :  { %1088 = vmatprep.subr.mxu0 %v1011_v12 }
 0x477   :  { %1089 = vmatpush2.msra.mxu0 %v1010_v13 }
 0x478   :  { %1090 = vmatprep.subr.mxu0 %v1009_v14  ;;  %v1227_v14 = vld [vmem:[%s1796_s11 + $0x1] ss:$8 sm:$0x3] }
 0x479   :  { %1091 = vmatpush2.msra.mxu0 %v1008_v15 }
 0x47a   :  { %1092 = vmatprep.subr.mxu0 %v1007_v17 }
 0x47b   :  { %1093 = vmatpush2.msra.mxu0 %v1006_v18 }
 0x47c   :  { %1094 = vmatprep.subr.mxu0 %v1005_v19 }
 0x47d   :  { %1095 = vmatpush2.msra.mxu0 %v1004_v20 }
 0x47e   :  { %1096 = vmatprep.subr.mxu0 %v1003_v21 }
 0x47f   :  { %1097 = vmatpush2.msra.mxu0 %v1002_v24 }
 0x524   :  { %v854_v25 = vpop.f32.mrf.mxu1 }
 0x525   :  { %v859_v26 = vrot.slane %v854_v25, 4  ;;  %v873_v27 = vmul.f32 %v854_v25, %v854_v25 }
 0x526   :  { %v856_v28 = vpop.f32.mrf.mxu1 }
 0x527   :  { %v860_v44 = vadd.f32 %v859_v26, %v854_v25  ;;  %v875_v29 = vrot.slane %v873_v27, 4  ;;  %v865_v30 = vrot.slane %v856_v28, 4  ;;  %v874_v31 = vmul.f32 %v856_v28, %v856_v28 }
 0x529   :  { %v861_v32 = vrot.slane %v860_v44, 2  ;;  %v876_v33 = vadd.f32 %v875_v29, %v873_v27  ;;  %v866_v35 = vadd.f32 %v865_v30, %v856_v28  ;;  %v881_v36 = vrot.slane %v874_v31, 4 }
 0x52b   :  { %v862_v38 = vadd.f32 %v861_v32, %v860_v44  ;;  %v877_v39 = vrot.slane %v876_v33, 2  ;;  %v867_v40 = vrot.slane %v866_v35, 2  ;;  %v882_v41 = vadd.f32 %v881_v36, %v874_v31 }
 0x52d   :  { %v863_v42 = vrot.slane %v862_v38, 1  ;;  %v878_v43 = vadd.f32 %v877_v39, %v876_v33  ;;  %v868_v45 = vadd.f32 %v867_v40, %v866_v35  ;;  %v883_v37 = vrot.slane %v882_v41, 2 }
 0x52f   :  { %v864_v34 = vadd.f32 %v863_v42, %v862_v38  ;;  %v879_v46 = vrot.slane %v878_v43, 1  ;;  %v869_v47 = vrot.slane %v868_v45, 1  ;;  %v884_v48 = vadd.f32 %v883_v37, %v882_v41 }
 0x531   :  { %v871_v49 = vmul.f32 0.125, %v864_v34  ;;  %v880_v50 = vadd.f32 %v879_v46, %v878_v43  ;;  %v870_v51 = vadd.f32 %v869_v47, %v868_v45  ;;  %v885_v52 = vrot.slane %v884_v48, 1 }
 0x533   :  { %v887_v53 = vmul.f32 0.125, %v880_v50  ;;  %v889_v54 = vmul.f32 %v871_v49, %v871_v49  ;;  %v872_v55 = vmul.f32 0.125, %v870_v51  ;;  %v886_v56 = vadd.f32 %v885_v52, %v884_v48 }
 0x535   :  { %v891_v57 = vsub.f32 %v887_v53, %v889_v54  ;;  %v888_v58 = vmul.f32 0.125, %v886_v56  ;;  %v890_v59 = vmul.f32 %v872_v55, %v872_v55 }
 0x537   :  { %v893_v60 = vmax.f32 %v891_v57, 0.0  ;;  %v892_v61 = vsub.f32 %v888_v58, %v890_v59 }
 0x539   :  { %v896_v62 = vadd.f32 1e-05, %v893_v60  ;;  %v894_v63 = vmax.f32 %v892_v61, 0.0 }
 0x53b   :  { %v897_v0 = vadd.f32 1e-05, %v894_v63  ;;  %1391 = vrsqrt.f32 %v896_v62 }
 0x53d   :  { %1393 = vrsqrt.f32 %v897_v0 }
 0x548   :  { %v1392_v1 = vpop.eup %1391 }
 0x54a   :  { %v1394_v2 = vpop.eup %1393 }
 0x54b   :  { %v902_v3 = vcombine.low %v1392_v1, %v1394_v2 }
 0x54d   :  { %v909_v4 = vrot.slane %v902_v3, %v1668_v16 }
 0x54f   :  { %v916_v6 = vrot.slane %v909_v4, %v1668_v16 }
 0x551   :  { %v918_v7 = vmul.f32 %v916_v6, %v895_v5 }
 0x553   :  { %v925_v8 = vrot.slane %v918_v7, %v1675_v22  ;;  %v929_v9 = vrot.slane %v918_v7, %v1677_v23 }
 0x555   :  { %v932_v10 = vmul.f32 %v925_v8, %v871_v49  ;;  %v933_v11 = vmul.f32 %v929_v9, %v872_v55  ;;  %v954_v18 = vmul.f32 %v929_v9, %v856_v28  ;;  %v953_v20 = vmul.f32 %v925_v8, %v854_v25  ;;  %v1141_v8 = vld [vmem:[%s1797_s12] ss:$8 sm:$0x3] }
 0x557   :  { %v936_v12 = vcombine.low %v932_v10, %v933_v11 }
 0x559   :  { %v943_v13 = vrot.slane %v936_v12, %v1668_v16 }
 0x55b   :  { %v950_v15 = vrot.slane %v943_v13, %v1668_v16 }
 0x55d   :  { %v952_v17 = vsub.f32 %v1227_v14, %v950_v15 }
 0x55f   :  { %v963_v19 = vrot.slane %v952_v17, %v1677_v23  ;;  %v959_v21 = vrot.slane %v952_v17, %v1675_v22 }
 0x561   :  { %v967_v24 = vadd.f32 %v963_v19, %v954_v18  ;;  %v966_v26 = vadd.f32 %v959_v21, %v953_v20  ;;  %v1228_v18 = vld [vmem:[%s1797_s12 + $0x1] ss:$8 sm:$0x3] }
 0x563   :  { %v969_v27 = vmax.f32 %v967_v24, 0.0  ;;  %v968_v44 = vmax.f32 %v966_v26, 0.0 }
 0x565   :  { %1098 = vmatprep.mubr.f32.mxu0 %v969_v27 }
 0x566   :  { %1099 = vmatmul.mubr.f32.vlgmr.msra.gmra.mxu0 %v968_v44 }
 0x626   :  { %v1100_v29 = vpop.f32.mrf.mxu0 }
 0x627   :  { %v1105_v30 = vrot.slane %v1100_v29, 4  ;;  %v1119_v31 = vmul.f32 %v1100_v29, %v1100_v29 }
 0x628   :  { %v1102_v32 = vpop.f32.mrf.mxu0 }
 0x629   :  { %v1106_v33 = vadd.f32 %v1105_v30, %v1100_v29  ;;  %v1121_v35 = vrot.slane %v1119_v31, 4  ;;  %v1111_v36 = vrot.slane %v1102_v32, 4  ;;  %v1120_v38 = vmul.f32 %v1102_v32, %v1102_v32 }
 0x62b   :  { %v1107_v28 = vrot.slane %v1106_v33, 2  ;;  %v1122_v39 = vadd.f32 %v1121_v35, %v1119_v31  ;;  %v1112_v40 = vadd.f32 %v1111_v36, %v1102_v32  ;;  %v1127_v25 = vrot.slane %v1120_v38, 4 }
 0x62d   :  { %v1108_v41 = vadd.f32 %v1107_v28, %v1106_v33  ;;  %v1123_v42 = vrot.slane %v1122_v39, 2  ;;  %v1113_v43 = vrot.slane %v1112_v40, 2  ;;  %v1128_v45 = vadd.f32 %v1127_v25, %v1120_v38 }
 0x62f   :  { %v1109_v37 = vrot.slane %v1108_v41, 1  ;;  %v1124_v34 = vadd.f32 %v1123_v42, %v1122_v39  ;;  %v1114_v46 = vadd.f32 %v1113_v43, %v1112_v40  ;;  %v1129_v47 = vrot.slane %v1128_v45, 2 }
 0x631   :  { %v1110_v48 = vadd.f32 %v1109_v37, %v1108_v41  ;;  %v1125_v49 = vrot.slane %v1124_v34, 1  ;;  %v1115_v50 = vrot.slane %v1114_v46, 1  ;;  %v1130_v51 = vadd.f32 %v1129_v47, %v1128_v45 }
 0x633   :  { %v1117_v52 = vmul.f32 0.125, %v1110_v48  ;;  %v1126_v53 = vadd.f32 %v1125_v49, %v1124_v34  ;;  %v1116_v54 = vadd.f32 %v1115_v50, %v1114_v46  ;;  %v1131_v55 = vrot.slane %v1130_v51, 1 }
 0x635   :  { %v1133_v56 = vmul.f32 0.125, %v1126_v53  ;;  %v1135_v57 = vmul.f32 %v1117_v52, %v1117_v52  ;;  %v1118_v58 = vmul.f32 0.125, %v1116_v54  ;;  %v1132_v59 = vadd.f32 %v1131_v55, %v1130_v51 }
 0x637   :  { %v1137_v60 = vsub.f32 %v1133_v56, %v1135_v57  ;;  %v1134_v61 = vmul.f32 0.125, %v1132_v59  ;;  %v1136_v62 = vmul.f32 %v1118_v58, %v1118_v58 }
 0x639   :  { %v1139_v63 = vmax.f32 %v1137_v60, 0.0  ;;  %v1138_v0 = vsub.f32 %v1134_v61, %v1136_v62 }
 0x63b   :  { %v1142_v1 = vadd.f32 1e-05, %v1139_v63  ;;  %v1140_v2 = vmax.f32 %v1138_v0, 0.0 }
 0x63d   :  { %v1143_v3 = vadd.f32 1e-05, %v1140_v2  ;;  %1395 = vrsqrt.f32 %v1142_v1 }
 0x63f   :  { %1397 = vrsqrt.f32 %v1143_v3 }
 0x64a   :  { %v1396_v4 = vpop.eup %1395 }
 0x64c   :  { %v1398_v5 = vpop.eup %1397 }
 0x64d   :  { %v1148_v6 = vcombine.low %v1396_v4, %v1398_v5 }
 0x64f   :  { %v1155_v7 = vrot.slane %v1148_v6, %v1668_v16 }
 0x651   :  { %v1162_v9 = vrot.slane %v1155_v7, %v1668_v16 }
 0x653   :  { %v1164_v10 = vmul.f32 %v1162_v9, %v1141_v8 }
 0x655   :  { %v1171_v11 = vrot.slane %v1164_v10, %v1675_v22  ;;  %v1175_v12 = vrot.slane %v1164_v10, %v1677_v23 }
 0x657   :  { %v1178_v13 = vmul.f32 %v1171_v11, %v1117_v52  ;;  %v1179_v14 = vmul.f32 %v1175_v12, %v1118_v58  ;;  %v1199_v21 = vmul.f32 %v1171_v11, %v1100_v29  ;;  %v1200_v24 = vmul.f32 %v1175_v12, %v1102_v32 }
 0x659   :  { %v1182_v15 = vcombine.low %v1178_v13, %v1179_v14 }
 0x65b   :  { %v1189_v17 = vrot.slane %v1182_v15, %v1668_v16 }
 0x65d   :  { %v1196_v19 = vrot.slane %v1189_v17, %v1668_v16 }
 0x65f   :  { %v1198_v20 = vsub.f32 %v1228_v18, %v1196_v19 }
 0x661   :  { %v1205_v26 = vrot.slane %v1198_v20, %v1675_v22  ;;  %v1209_v27 = vrot.slane %v1198_v20, %v1677_v23 }
 0x663   :  { %v1212_v44 = vadd.f32 %v1205_v26, %v1199_v21  ;;  %v1213_v30 = vadd.f32 %v1209_v27, %v1200_v24 }
 0x665   :  { %1399 = vtanh.f32 %v1212_v44 }
 0x666   :  { %1401 = vtanh.f32 %v1213_v30 }
 0x672   :  { %v1400_v31 = vpop.eup %1399 }
 0x673   :  { %v1402_v33 = vpop.eup %1401  ;;  %1216 = vst [vmem:[%s1798_s13] sm:$0xff] %v1400_v31 }
 0x674   :  { %1217 = vst [vmem:[%s1798_s13 + $0x8] sm:$0xff] %v1402_v33 }
 0x675   :  { %1222 = vsyncpa [#allocation3], 1 }
 0x676   :  { %1223 = vsyncpa [#allocation5], 1 }
 0x677   :  { %1224 = vsyncpa [#allocation8], 1 }
 0x678   :  { %1225 = vsyncpa [#allocation11], 1 }

</bundles_post_ra>
